<compile_context>
chip_gen: v7x
topology: tpu7x:2x2x1
jax: 0.10.0
libtpu: 0.0.40
codegen_flags: <defaults>
</compile_context>

<pallas_src>
import math

import jax
import jax.numpy as jnp
from jax import lax
from jax.experimental import pallas as pl
from jax.experimental.pallas import tpu as pltpu

SELU_ALPHA = 1.6732632423543772848170429916717
SELU_SCALE = 1.0507009873554804934193349852946
LANE = 128
SUBLANE_BF16 = 16  # bf16 packs two rows per sublane -> min row quantum 16


def _selu(x):
    # f32 on the EUP (safe on v5e which has no bf16 EUP/VPU).  exp argument is
    # clamped to <= 0 so the discarded branch never produces inf (VJP-safe).
    return SELU_SCALE * jnp.where(
        x > 0, x, SELU_ALPHA * (jnp.exp(jnp.minimum(x, 0.0)) - 1.0))


def _round_up(n, m):
    return ((n + m - 1) // m) * m


def _cdiv(a, b):
    return -(-a // b)


def _pad2d(a, rows, cols):
    return jnp.pad(a, ((0, rows - a.shape[0]), (0, cols - a.shape[1])))


# --------------------------------------------------------------------------- #
# One-time parameter packing (hoisted out of the per-call path)
# --------------------------------------------------------------------------- #
def prepare_snn_params(hidden_weights, w_out, b_out):
    """Pad feature dims to lane multiples of 128 and cast weights to bf16, ONCE.

    Exactness: hidden layers are bias-free and SELU(0) == 0, so zero-padded
    columns stay exactly zero through the whole chain; padded output columns
    are sliced off in the wrapper.  The first-layer K dim is kept at d_in
    (rounded to the bf16 sublane quantum only if needed) so no K work is wasted.
    """
    d_in = int(hidden_weights[0].shape[0])
    d_out = int(w_out.shape[1])
    d_in_k = d_in if d_in % SUBLANE_BF16 == 0 else _round_up(d_in, SUBLANE_BF16)
    d_out_p = _round_up(d_out, LANE)

    padded_ws = []
    prev_p = d_in_k
    for w in hidden_weights:
        nxt_p = _round_up(int(w.shape[1]), LANE)
        padded_ws.append(_pad2d(w, prev_p, nxt_p).astype(jnp.bfloat16))
        prev_p = nxt_p
    w_out_p = _pad2d(w_out, prev_p, d_out_p).astype(jnp.bfloat16)
    b_out_p = (jnp.pad(b_out, (0, d_out_p - d_out))
               .reshape(1, d_out_p).astype(jnp.float32))

    return dict(padded_ws=padded_ws, w_out_p=w_out_p, b_out_p=b_out_p,
                d_in=d_in, d_in_k=d_in_k, d_out=d_out, d_out_p=d_out_p)


# --------------------------------------------------------------------------- #
# Kernel
# --------------------------------------------------------------------------- #
def _make_snn_kernel(n_hidden, sub_tile, n_sub):
    """Fused MLP: n_hidden bias-free SELU layers + final Linear (+bias),
    processed in row sub-chunks of `sub_tile` to bound vreg live ranges."""

    def kernel(*refs):
        x_ref = refs[0]
        w_refs = refs[1:1 + n_hidden]
        w_out_ref = refs[1 + n_hidden]
        b_out_ref = refs[2 + n_hidden]
        o_ref = refs[3 + n_hidden]

        b_out = b_out_ref[...]  # (1, d_out_p) f32, broadcast over rows (hoisted)

        def row_chunk(r, carry):
            row0 = r * sub_tile
            if n_sub > 1:
                row0 = pl.multiple_of(row0, sub_tile)
            # bf16 cast happens in-kernel: x stays f32/unpadded in HBM.
            h = x_ref[pl.ds(row0, sub_tile), :].astype(jnp.bfloat16)
            for w_ref in w_refs:
                acc = jnp.dot(h, w_ref[...], preferred_element_type=jnp.float32)
                h = _selu(acc).astype(jnp.bfloat16)
                # TODO(synk): training-mode AlphaDropout (stochastic masking)
                # omitted; eval-mode AlphaDropout is the identity.
            out = jnp.dot(h, w_out_ref[...], preferred_element_type=jnp.float32)
            o_ref[pl.ds(row0, sub_tile), :] = (out + b_out).astype(o_ref.dtype)
            return carry

        if n_sub == 1:
            row_chunk(0, 0)
        else:
            # bounded live ranges per chunk: MXU on chunk i+1 overlaps EUP exps
            # of chunk i on the dependent SELU chain.
            lax.fori_loop(0, n_sub, row_chunk, 0, unroll=True)

    return kernel


# --------------------------------------------------------------------------- #
# Wrapper
# --------------------------------------------------------------------------- #
def snn_forward(x, params, *, batch_tile=512, single_buffer_weights=True):
    """x: (B, d_in) f32; params: output of prepare_snn_params.
    Returns (B, d_out) in x.dtype."""
    padded_ws = params["padded_ws"]
    w_out_p = params["w_out_p"]
    b_out_p = params["b_out_p"]
    d_in, d_in_k = params["d_in"], params["d_in_k"]
    d_out, d_out_p = params["d_out"], params["d_out_p"]
    n_hidden = len(padded_ws)

    B = x.shape[0]
    assert x.shape[1] == d_in

    # ---- per-generation VMEM budget (~75% of capacity; v5e/v6e 128 MiB, v7x 64 MiB)
    try:
        vmem_cap = int(pltpu.get_tpu_info().vmem_capacity_bytes)
    except Exception:
        vmem_cap = 64 << 20
    vmem_budget = int(0.75 * vmem_cap)

    # ---- resident weight footprint (single-buffered: block index never changes)
    w_bytes = (sum(int(w.size) * 2 for w in padded_ws)
               + int(w_out_p.size) * 2 + int(b_out_p.size) * 4)
    w_resident = w_bytes * (1 if single_buffer_weights else 2)
    if w_resident > 0.6 * vmem_cap:
        # TODO(synk): stream weight slabs (K/N-tiled) with pltpu.emit_pipeline when
        # the whole weight set no longer fits VMEM (first breaks on v7x's 64 MiB).
        raise ValueError(
            f"SNN weights ({w_resident >> 20} MiB) exceed the resident-VMEM "
            "budget; weight streaming is not implemented.")

    dims = [d_in_k] + [int(w.shape[1]) for w in padded_ws] + [d_out_p]

    # ---- batch tiling: biggest tile that fits VMEM, rounded to 16 rows (bf16
    # sublane packing), but keep >= 2 grid steps so the "parallel" axis can be
    # split across v7x's two TensorCores and x/out DMAs pipeline under compute.
    batch_tile = max(SUBLANE_BF16, _round_up(min(batch_tile, B), SUBLANE_BF16))
    if B >= 2 * SUBLANE_BF16:
        batch_tile = min(batch_tile, _round_up(_cdiv(B, 2), SUBLANE_BF16))

    def _act_bytes(bt):
        sub = bt // _cdiv(bt, 256)
        return (2 * bt * d_in_k * 4          # x tile, f32, double-buffered
                + 2 * bt * d_out_p * 4       # out tile, f32, double-buffered
                + 4 * sub * max(dims) * 4)   # in-flight f32 intermediates

    while (batch_tile > SUBLANE_BF16
           and w_resident + _act_bytes(batch_tile) > vmem_budget):
        batch_tile = max(SUBLANE_BF16, _round_up(batch_tile // 2, SUBLANE_BF16))

    B_p = _round_up(B, batch_tile)
    n_tiles = B_p // batch_tile

    # Only pad when strictly needed (no wrapper pass over x in the common case).
    x_p = x if B_p == B else jnp.pad(x, ((0, B_p - B), (0, 0)))
    if d_in_k != d_in:
        x_p = jnp.pad(x_p, ((0, 0), (0, d_in_k - d_in)))

    # ---- in-kernel row sub-tiling (<= 256 rows per chunk)
    n_sub = _cdiv(batch_tile, 256)
    while batch_tile % n_sub:
        n_sub += 1
    sub_tile = batch_tile // n_sub

    # ---- block specs: batch tiled, weights/bias whole-array VMEM residents
    def _w_spec(shape):
        if single_buffer_weights:
            # block index never changes -> single buffer halves resident VMEM
            return pl.BlockSpec(shape, lambda i: (0, 0),
                                pipeline_mode=pl.Buffered(1))
        return pl.BlockSpec(shape, lambda i: (0, 0))

    in_specs = [pl.BlockSpec((batch_tile, d_in_k), lambda i: (i, 0))]
    in_specs += [_w_spec(tuple(int(s) for s in w.shape)) for w in padded_ws]
    in_specs.append(_w_spec(tuple(int(s) for s in w_out_p.shape)))
    in_specs.append(_w_spec((1, d_out_p)))
    out_spec = pl.BlockSpec((batch_tile, d_out_p), lambda i: (i, 0))

    # ---- cost estimate (helps XLA schedule around the custom call)
    flops = 2 * B_p * sum(a * b for a, b in zip(dims[:-1], dims[1:]))
    transcendentals = B_p * sum(int(w.shape[1]) for w in padded_ws)
    bytes_accessed = B_p * d_in_k * 4 + w_bytes + B_p * d_out_p * 4
    cost = pl.CostEstimate(flops=flops, transcendentals=transcendentals,
                           bytes_accessed=bytes_accessed)

    vmem_limit = int(min(max(int(1.5 * (w_resident + _act_bytes(batch_tile))),
                             8 << 20),
                         vmem_budget))

    out_p = pl.pallas_call(
        _make_snn_kernel(n_hidden, sub_tile, n_sub),
        out_shape=jax.ShapeDtypeStruct((B_p, d_out_p), jnp.float32),
        grid_spec=pltpu.PrefetchScalarGridSpec(
            num_scalar_prefetch=0,
            grid=(n_tiles,),
            in_specs=in_specs,
            out_specs=out_spec,
        ),
        compiler_params=pltpu.CompilerParams(
            dimension_semantics=("parallel",),
            vmem_limit_bytes=vmem_limit),
        cost_estimate=cost,
    )(x_p, *padded_ws, w_out_p, b_out_p)

    return out_p[:B, :d_out].astype(x.dtype)


# --------------------------------------------------------------------------- #
# Init matching the PyTorch module + references
# --------------------------------------------------------------------------- #
def init_snn_params(key, d_in, d_hidden, d_out, n_layers):
    """kaiming_normal_(fan_in, 'linear') -> N(0, 1/fan_in); biases -> 0.
    Weights are returned pre-transposed to (in, out)."""
    hidden_weights = []
    dims_in = [d_in] + [d_hidden] * (n_layers - 2)
    for din in dims_in:
        key, sub = jax.random.split(key)
        std = 1.0 / math.sqrt(din)  # gain('linear') = 1
        w = jax.random.normal(sub, (din, d_hidden), dtype=jnp.float32) * std
        hidden_weights.append(w)
    key, sub = jax.random.split(key)
    std = 1.0 / math.sqrt(d_hidden)
    w_out = jax.random.normal(sub, (d_hidden, d_out), dtype=jnp.float32) * std
    b_out = jnp.zeros((d_out,), dtype=jnp.float32)
    return hidden_weights, w_out, b_out


def _reference_f32(x, hidden_weights, w_out, b_out):
    h = x
    for w in hidden_weights:
        h = _selu(h @ w)
    return h @ w_out + b_out


def _reference_bf16(x, hidden_weights, w_out, b_out):
    """Emulates the kernel numerics: bf16 operands, f32 accumulation, f32 SELU."""
    h = x.astype(jnp.bfloat16)
    for w in hidden_weights:
        acc = jnp.dot(h, w.astype(jnp.bfloat16), preferred_element_type=jnp.float32)
        h = _selu(acc).astype(jnp.bfloat16)
    out = jnp.dot(h, w_out.astype(jnp.bfloat16), preferred_element_type=jnp.float32)
    return out + b_out


if __name__ == "__main__":
    # Small shapes consistent with the module's forward: x is (batch, d_in).
    # batch=256 with the >=2-tile clamp gives a 2-step "parallel" grid
    # (pipelining / v7x megacore); hidden/output dims get lane-padded to 128
    # once at prepare time; x flows through unpadded f32.
    batch, d_in, d_hidden, d_out, n_layers = 256, 32, 64, 16, 3
    dropout = 0.1  # unused in the eval-mode forward (AlphaDropout == identity)

    key = jax.random.PRNGKey(0)
    key, xkey = jax.random.split(key)
    x = jax.random.normal(xkey, (batch, d_in), dtype=jnp.float32)

    hidden_weights, w_out, b_out = init_snn_params(
        key, d_in, d_hidden, d_out, n_layers)
    params = prepare_snn_params(hidden_weights, w_out, b_out)  # one-time pad + bf16

    try:
        y = jax.block_until_ready(
            snn_forward(x, params, batch_tile=512, single_buffer_weights=True))
    except Exception:
        # Fallback if this JAX build rejects pl.Buffered(1) on constant-index
        # weight specs.
        y = jax.block_until_ready(
            snn_forward(x, params, batch_tile=512, single_buffer_weights=False))

    assert y.shape == (batch, d_out)

    y_ref16 = _reference_bf16(x, hidden_weights, w_out, b_out)  # kernel-numerics ref
    y_ref32 = _reference_f32(x, hidden_weights, w_out, b_out)   # full-f32 ref
    assert jnp.allclose(y, y_ref16, atol=1e-2, rtol=1e-2)
    assert jnp.allclose(y, y_ref32, atol=1e-1, rtol=1e-1)

    print("KERNEL_OK")
</pallas_src>

<mosaic_0001>
module attributes {stable_mosaic.version = 11 : i64} {
  func.func @kernel(%arg0: i32, %arg1: memref<128x32xf32, #tpu.memory_space<vmem>>, %arg2: memref<32x128xbf16, #tpu.memory_space<vmem>>, %arg3: memref<128x128xbf16, #tpu.memory_space<vmem>>, %arg4: memref<128x128xbf16, #tpu.memory_space<vmem>>, %arg5: memref<1x128xf32, #tpu.memory_space<vmem>>, %arg6: memref<128x128xf32, #tpu.memory_space<vmem>>) attributes {dimension_semantics = [#tpu.dimension_semantics<parallel>], iteration_bounds = array<i64: 2>, scalar_prefetch = 0 : i64, scratch_operands = 0 : i64, tpu.core_type = #tpu.core_type<tc>, window_params = [{transform_indices = @transform_0, window_bounds = array<i64: 128, 32>}, {pipeline_mode = #tpu.pipeline_mode<synchronous>, transform_indices = @transform_1, window_bounds = array<i64: 32, 128>}, {pipeline_mode = #tpu.pipeline_mode<synchronous>, transform_indices = @transform_2, window_bounds = array<i64: 128, 128>}, {pipeline_mode = #tpu.pipeline_mode<synchronous>, transform_indices = @transform_3, window_bounds = array<i64: 128, 128>}, {pipeline_mode = #tpu.pipeline_mode<synchronous>, transform_indices = @transform_4, window_bounds = array<i64: 1, 128>}, {transform_indices = @transform_5, window_bounds = array<i64: 128, 128>}]} {
    %c0 = arith.constant 0 : index
    %c0_0 = arith.constant 0 : index
    %0 = vector.load %arg5[%c0, %c0_0] : memref<1x128xf32, #tpu.memory_space<vmem>>, vector<1x128xf32>
    %c0_1 = arith.constant 0 : index
    %c0_2 = arith.constant 0 : index
    %1 = vector.load %arg1[%c0_1, %c0_2] : memref<128x32xf32, #tpu.memory_space<vmem>>, vector<128x32xf32>
    %2 = arith.truncf %1 : vector<128x32xf32> to vector<128x32xbf16>
    %c0_3 = arith.constant 0 : index
    %c0_4 = arith.constant 0 : index
    %3 = vector.load %arg2[%c0_3, %c0_4] : memref<32x128xbf16, #tpu.memory_space<vmem>>, vector<32x128xbf16>
    %cst = arith.constant dense<0.000000e+00> : vector<128x128xf32>
    %4 = tpu.matmul %2, %3, %cst {dimension_numbers = #tpu.dot_dimension_numbers<[1], [0], [0], [1], [0, 0, 1, 1], [], []>} : vector<128x32xbf16>, vector<32x128xbf16>, vector<128x128xf32> -> vector<128x128xf32>
    %cst_5 = arith.constant 0.000000e+00 : f32
    %5 = vector.broadcast %cst_5 : f32 to vector<128x128xf32>
    %6 = arith.cmpf ogt, %4, %5 : vector<128x128xf32>
    %cst_6 = arith.constant 0.000000e+00 : f32
    %7 = vector.broadcast %cst_6 : f32 to vector<128x128xf32>
    %8 = arith.minimumf %4, %7 : vector<128x128xf32>
    %9 = math.exp %8 : vector<128x128xf32>
    %cst_7 = arith.constant 1.000000e+00 : f32
    %10 = vector.broadcast %cst_7 : f32 to vector<128x128xf32>
    %11 = arith.subf %9, %10 : vector<128x128xf32>
    %cst_8 = arith.constant 1.67326319 : f32
    %12 = vector.broadcast %cst_8 : f32 to vector<128x128xf32>
    %13 = arith.mulf %12, %11 : vector<128x128xf32>
    %14 = arith.select %6, %4, %13 : vector<128x128xi1>, vector<128x128xf32>
    %cst_9 = arith.constant 1.05070102 : f32
    %15 = vector.broadcast %cst_9 : f32 to vector<128x128xf32>
    %16 = arith.mulf %15, %14 : vector<128x128xf32>
    %17 = arith.truncf %16 : vector<128x128xf32> to vector<128x128xbf16>
    %c0_10 = arith.constant 0 : index
    %c0_11 = arith.constant 0 : index
    %18 = vector.load %arg3[%c0_10, %c0_11] : memref<128x128xbf16, #tpu.memory_space<vmem>>, vector<128x128xbf16>
    %cst_12 = arith.constant dense<0.000000e+00> : vector<128x128xf32>
    %19 = tpu.matmul %17, %18, %cst_12 {dimension_numbers = #tpu.dot_dimension_numbers<[1], [0], [0], [1], [0, 0, 1, 1], [], []>} : vector<128x128xbf16>, vector<128x128xbf16>, vector<128x128xf32> -> vector<128x128xf32>
    %cst_13 = arith.constant 0.000000e+00 : f32
    %20 = vector.broadcast %cst_13 : f32 to vector<128x128xf32>
    %21 = arith.cmpf ogt, %19, %20 : vector<128x128xf32>
    %cst_14 = arith.constant 0.000000e+00 : f32
    %22 = vector.broadcast %cst_14 : f32 to vector<128x128xf32>
    %23 = arith.minimumf %19, %22 : vector<128x128xf32>
    %24 = math.exp %23 : vector<128x128xf32>
    %cst_15 = arith.constant 1.000000e+00 : f32
    %25 = vector.broadcast %cst_15 : f32 to vector<128x128xf32>
    %26 = arith.subf %24, %25 : vector<128x128xf32>
    %cst_16 = arith.constant 1.67326319 : f32
    %27 = vector.broadcast %cst_16 : f32 to vector<128x128xf32>
    %28 = arith.mulf %27, %26 : vector<128x128xf32>
    %29 = arith.select %21, %19, %28 : vector<128x128xi1>, vector<128x128xf32>
    %cst_17 = arith.constant 1.05070102 : f32
    %30 = vector.broadcast %cst_17 : f32 to vector<128x128xf32>
    %31 = arith.mulf %30, %29 : vector<128x128xf32>
    %32 = arith.truncf %31 : vector<128x128xf32> to vector<128x128xbf16>
    %c0_18 = arith.constant 0 : index
    %c0_19 = arith.constant 0 : index
    %33 = vector.load %arg4[%c0_18, %c0_19] : memref<128x128xbf16, #tpu.memory_space<vmem>>, vector<128x128xbf16>
    %cst_20 = arith.constant dense<0.000000e+00> : vector<128x128xf32>
    %34 = tpu.matmul %32, %33, %cst_20 {dimension_numbers = #tpu.dot_dimension_numbers<[1], [0], [0], [1], [0, 0, 1, 1], [], []>} : vector<128x128xbf16>, vector<128x128xbf16>, vector<128x128xf32> -> vector<128x128xf32>
    %35 = vector.broadcast %0 : vector<1x128xf32> to vector<128x128xf32>
    %36 = arith.addf %34, %35 : vector<128x128xf32>
    %c0_21 = arith.constant 0 : index
    %c0_22 = arith.constant 0 : index
    %37 = vector.load %arg6[%c0_21, %c0_22] : memref<128x128xf32, #tpu.memory_space<vmem>>, vector<128x128xf32>
    tpu.vector_store %arg6[%c0_21, %c0_22], %36 {strides = array<i32>} : memref<128x128xf32, #tpu.memory_space<vmem>>, vector<128x128xf32>,
    return
  }
  func.func @transform_0(%arg0: i32) -> (i32, i32) {
    %c0_i32 = arith.constant 0 : i32
    %c0_i32_0 = arith.constant 0 : i32
    return %arg0, %c0_i32 : i32, i32
  }
  func.func @transform_1(%arg0: i32) -> (i32, i32) {
    %c0_i32 = arith.constant 0 : i32
    %c0_i32_0 = arith.constant 0 : i32
    %c0_i32_1 = arith.constant 0 : i32
    return %c0_i32, %c0_i32_0 : i32, i32
  }
  func.func @transform_2(%arg0: i32) -> (i32, i32) {
    %c0_i32 = arith.constant 0 : i32
    %c0_i32_0 = arith.constant 0 : i32
    %c0_i32_1 = arith.constant 0 : i32
    return %c0_i32, %c0_i32_0 : i32, i32
  }
  func.func @transform_3(%arg0: i32) -> (i32, i32) {
    %c0_i32 = arith.constant 0 : i32
    %c0_i32_0 = arith.constant 0 : i32
    %c0_i32_1 = arith.constant 0 : i32
    return %c0_i32, %c0_i32_0 : i32, i32
  }
  func.func @transform_4(%arg0: i32) -> (i32, i32) {
    %c0_i32 = arith.constant 0 : i32
    %c0_i32_0 = arith.constant 0 : i32
    %c0_i32_1 = arith.constant 0 : i32
    return %c0_i32, %c0_i32_0 : i32, i32
  }
  func.func @transform_5(%arg0: i32) -> (i32, i32) {
    %c0_i32 = arith.constant 0 : i32
    %c0_i32_0 = arith.constant 0 : i32
    return %arg0, %c0_i32 : i32, i32
  }
}

module attributes {stable_mosaic.version = 11 : i64} {
  func.func @kernel(%arg0: i32, %arg1: memref<128x32xf32, #tpu.memory_space<vmem>>, %arg2: memref<32x128xbf16, #tpu.memory_space<vmem>>, %arg3: memref<128x128xbf16, #tpu.memory_space<vmem>>, %arg4: memref<128x128xbf16, #tpu.memory_space<vmem>>, %arg5: memref<1x128xf32, #tpu.memory_space<vmem>>, %arg6: memref<128x128xf32, #tpu.memory_space<vmem>>) attributes {dimension_semantics = [#tpu.dimension_semantics<parallel>], iteration_bounds = array<i64: 2>, scalar_prefetch = 0 : i64, scratch_operands = 0 : i64, tpu.core_type = #tpu.core_type<tc>, window_params = [{transform_indices = @transform_0, window_bounds = array<i64: 128, 32>}, {pipeline_mode = #tpu.pipeline_mode<synchronous>, transform_indices = @transform_1, window_bounds = array<i64: 32, 128>}, {pipeline_mode = #tpu.pipeline_mode<synchronous>, transform_indices = @transform_2, window_bounds = array<i64: 128, 128>}, {pipeline_mode = #tpu.pipeline_mode<synchronous>, transform_indices = @transform_3, window_bounds = array<i64: 128, 128>}, {pipeline_mode = #tpu.pipeline_mode<synchronous>, transform_indices = @transform_4, window_bounds = array<i64: 1, 128>}, {transform_indices = @transform_5, window_bounds = array<i64: 128, 128>}]} {
    %c0 = arith.constant 0 : index
    %c0_0 = arith.constant 0 : index
    %0 = vector.load %arg5[%c0, %c0_0] : memref<1x128xf32, #tpu.memory_space<vmem>>, vector<1x128xf32>
    %c0_1 = arith.constant 0 : index
    %c0_2 = arith.constant 0 : index
    %1 = vector.load %arg1[%c0_1, %c0_2] : memref<128x32xf32, #tpu.memory_space<vmem>>, vector<128x32xf32>
    %2 = arith.truncf %1 : vector<128x32xf32> to vector<128x32xbf16>
    %c0_3 = arith.constant 0 : index
    %c0_4 = arith.constant 0 : index
    %3 = vector.load %arg2[%c0_3, %c0_4] : memref<32x128xbf16, #tpu.memory_space<vmem>>, vector<32x128xbf16>
    %cst = arith.constant dense<0.000000e+00> : vector<128x128xf32>
    %4 = tpu.matmul %2, %3, %cst {dimension_numbers = #tpu.dot_dimension_numbers<[1], [0], [0], [1], [0, 0, 1, 1], [], []>} : vector<128x32xbf16>, vector<32x128xbf16>, vector<128x128xf32> -> vector<128x128xf32>
    %cst_5 = arith.constant 0.000000e+00 : f32
    %5 = vector.broadcast %cst_5 : f32 to vector<128x128xf32>
    %6 = arith.cmpf ogt, %4, %5 : vector<128x128xf32>
    %cst_6 = arith.constant 0.000000e+00 : f32
    %7 = vector.broadcast %cst_6 : f32 to vector<128x128xf32>
    %8 = arith.minimumf %4, %7 : vector<128x128xf32>
    %9 = math.exp %8 : vector<128x128xf32>
    %cst_7 = arith.constant 1.000000e+00 : f32
    %10 = vector.broadcast %cst_7 : f32 to vector<128x128xf32>
    %11 = arith.subf %9, %10 : vector<128x128xf32>
    %cst_8 = arith.constant 1.67326319 : f32
    %12 = vector.broadcast %cst_8 : f32 to vector<128x128xf32>
    %13 = arith.mulf %12, %11 : vector<128x128xf32>
    %14 = arith.select %6, %4, %13 : vector<128x128xi1>, vector<128x128xf32>
    %cst_9 = arith.constant 1.05070102 : f32
    %15 = vector.broadcast %cst_9 : f32 to vector<128x128xf32>
    %16 = arith.mulf %15, %14 : vector<128x128xf32>
    %17 = arith.truncf %16 : vector<128x128xf32> to vector<128x128xbf16>
    %c0_10 = arith.constant 0 : index
    %c0_11 = arith.constant 0 : index
    %18 = vector.load %arg3[%c0_10, %c0_11] : memref<128x128xbf16, #tpu.memory_space<vmem>>, vector<128x128xbf16>
    %cst_12 = arith.constant dense<0.000000e+00> : vector<128x128xf32>
    %19 = tpu.matmul %17, %18, %cst_12 {dimension_numbers = #tpu.dot_dimension_numbers<[1], [0], [0], [1], [0, 0, 1, 1], [], []>} : vector<128x128xbf16>, vector<128x128xbf16>, vector<128x128xf32> -> vector<128x128xf32>
    %cst_13 = arith.constant 0.000000e+00 : f32
    %20 = vector.broadcast %cst_13 : f32 to vector<128x128xf32>
    %21 = arith.cmpf ogt, %19, %20 : vector<128x128xf32>
    %cst_14 = arith.constant 0.000000e+00 : f32
    %22 = vector.broadcast %cst_14 : f32 to vector<128x128xf32>
    %23 = arith.minimumf %19, %22 : vector<128x128xf32>
    %24 = math.exp %23 : vector<128x128xf32>
    %cst_15 = arith.constant 1.000000e+00 : f32
    %25 = vector.broadcast %cst_15 : f32 to vector<128x128xf32>
    %26 = arith.subf %24, %25 : vector<128x128xf32>
    %cst_16 = arith.constant 1.67326319 : f32
    %27 = vector.broadcast %cst_16 : f32 to vector<128x128xf32>
    %28 = arith.mulf %27, %26 : vector<128x128xf32>
    %29 = arith.select %21, %19, %28 : vector<128x128xi1>, vector<128x128xf32>
    %cst_17 = arith.constant 1.05070102 : f32
    %30 = vector.broadcast %cst_17 : f32 to vector<128x128xf32>
    %31 = arith.mulf %30, %29 : vector<128x128xf32>
    %32 = arith.truncf %31 : vector<128x128xf32> to vector<128x128xbf16>
    %c0_18 = arith.constant 0 : index
    %c0_19 = arith.constant 0 : index
    %33 = vector.load %arg4[%c0_18, %c0_19] : memref<128x128xbf16, #tpu.memory_space<vmem>>, vector<128x128xbf16>
    %cst_20 = arith.constant dense<0.000000e+00> : vector<128x128xf32>
    %34 = tpu.matmul %32, %33, %cst_20 {dimension_numbers = #tpu.dot_dimension_numbers<[1], [0], [0], [1], [0, 0, 1, 1], [], []>} : vector<128x128xbf16>, vector<128x128xbf16>, vector<128x128xf32> -> vector<128x128xf32>
    %35 = vector.broadcast %0 : vector<1x128xf32> to vector<128x128xf32>
    %36 = arith.addf %34, %35 : vector<128x128xf32>
    %c0_21 = arith.constant 0 : index
    %c0_22 = arith.constant 0 : index
    %37 = vector.load %arg6[%c0_21, %c0_22] : memref<128x128xf32, #tpu.memory_space<vmem>>, vector<128x128xf32>
    tpu.vector_store %arg6[%c0_21, %c0_22], %36 {strides = array<i32>} : memref<128x128xf32, #tpu.memory_space<vmem>>, vector<128x128xf32>,
    return
  }
  func.func @transform_0(%arg0: i32) -> (i32, i32) {
    %c0_i32 = arith.constant 0 : i32
    %c0_i32_0 = arith.constant 0 : i32
    return %arg0, %c0_i32 : i32, i32
  }
  func.func @transform_1(%arg0: i32) -> (i32, i32) {
    %c0_i32 = arith.constant 0 : i32
    %c0_i32_0 = arith.constant 0 : i32
    %c0_i32_1 = arith.constant 0 : i32
    return %c0_i32, %c0_i32_0 : i32, i32
  }
  func.func @transform_2(%arg0: i32) -> (i32, i32) {
    %c0_i32 = arith.constant 0 : i32
    %c0_i32_0 = arith.constant 0 : i32
    %c0_i32_1 = arith.constant 0 : i32
    return %c0_i32, %c0_i32_0 : i32, i32
  }
  func.func @transform_3(%arg0: i32) -> (i32, i32) {
    %c0_i32 = arith.constant 0 : i32
    %c0_i32_0 = arith.constant 0 : i32
    %c0_i32_1 = arith.constant 0 : i32
    return %c0_i32, %c0_i32_0 : i32, i32
  }
  func.func @transform_4(%arg0: i32) -> (i32, i32) {
    %c0_i32 = arith.constant 0 : i32
    %c0_i32_0 = arith.constant 0 : i32
    %c0_i32_1 = arith.constant 0 : i32
    return %c0_i32, %c0_i32_0 : i32, i32
  }
  func.func @transform_5(%arg0: i32) -> (i32, i32) {
    %c0_i32 = arith.constant 0 : i32
    %c0_i32_0 = arith.constant 0 : i32
    return %arg0, %c0_i32 : i32, i32
  }
}

</mosaic_0001>

<bundles_post_ra>
// kernel: tpu_custom_call.1
= control target key start
LH: loop header
LB: loop body
LE: loop exit
PB: predicated region body
PF: predicated region fallthrough
CT: control target
= control target key end

     0   :  { %10 = vsyncpa [#allocation3], 0  ;;  %s1876_s0 = inlined_call_operand.vmem [shape: f32[256,32], index: 0, kind: input, shape index: {}]   ;;  %s1877_s1 = inlined_call_operand.vmem [shape: bf16[32,128], index: 1, kind: input, shape index: {}]   ;;  %s1878_s2 = inlined_call_operand.vmem [shape: bf16[128,128], index: 2, kind: input, shape index: {}]   ;;  %s1879_s3 = inlined_call_operand.vmem [shape: bf16[128,128], index: 3, kind: input, shape index: {}]   ;;  %s1880_s4 = inlined_call_operand.vmem [shape: f32[1,128], index: 4, kind: input, shape index: {}]   ;;  %s1881_s5 = inlined_call_operand.hbm [shape: f32[256,128], index: 5, kind: output, shape index: {}]  }
   0x1   :  { %12 = vsyncpa [#allocation3 + $0x1], 0  ;;  %s1500_s18 = smov 0   ;;  %s1502_s19 = smov 0  }
   0x2   :  { %s1504_s20 = smov 0   ;;  %s1506_s21 = smov 0  }
   0x3 LB: > { %s1521_s22 = sadd.s32 4294967295, %s1465_s21   ;;  %s1082_s23 = sadd.s32 4294967294, %s1465_s21   ;;  %s1465_s21 = sphi %s1506_s21, %s1887_s21   ;;  %s1461_s20 = sphi %s1504_s20, %s1886_s20   ;;  %s1457_s19 = sphi %s1502_s19, %s1885_s19   ;;  %s1453_s18 = sphi %s1500_s18, %s1884_s18  }
   0x4   : > { %s1525_s24 = sadd.s32 1, %s1465_s21   ;;  %s135_s25 = sadd.s32 1, %s1461_s20 }
   0x5   : > { %s132_s26 = ssub.s32 %s1465_s21, %s1525_s24  ;;  %p145_p0 = scmp.ne.s32.totalorder %s1461_s20, %s1457_s19 }
   0x6   : > { %p133_p1 = scmp.eq.s32.totalorder %s132_s26, 0  ;;  %p146_p2 = scmp.eq.s32.totalorder %s1521_s22, 1 }
   0x7   : > { %p151_p3 = scmp.ne.s32.totalorder %s1457_s19, %s1453_s18  ;;  %p152_p4 = scmp.eq.s32.totalorder %s1082_s23, 1 }
   0x8   : > { %s1536_s27 = scalar_select %p133_p1, %s1461_s20, %s135_s25  }
   0x9   : > { %p1538_p5 = por %p146_p2, %p145_p0  ;;  %p1542_p6 = por %p152_p4, %p151_p3 }
   0xa   : > { %p1085_p7 = scmp.ge.s32.totalorder %s1465_s21, 1  ;;  %p191_p8 = scmp.lt.s32.totalorder %s1465_s21, 3 }
   0xc   : > { %p192_p9 = pnand %p1085_p7, %p191_p8 }
   0xd   : > { %v1321_v0 = vld [vmem:[%s1877_s1] sm:$0xff] (!%p192_p9)   ;;  %s1087_s7 = sshll.u32 (!%p192_p9), %s1521_s22, 4  ;;  %v1322_v1 = vld [vmem:[%s1877_s1 + $0x8] sm:$0xff] (!%p192_p9)   ;;  %vm268_vm0 = vcmask (!%p192_p9), 261120   ;;  %v1325_v28 = vld [vmem:[%s1878_s2 + $0x10] sm:$0xff] (!%p192_p9)   ;;  %s216_s14 = sand.u32 (!%p192_p9), 1, %s1457_s19  }
   0xe   : > { %195 = sbr.rel (%p192_p9) target bundleno = 774 (0x306), region = 40  ;;  %p220_p10 = scmp.lt.s32.totalorder (!%p192_p9), %s1087_s7, 31  ;;  %1196 = vmatprep.subr.bf16.mxu0 (!%p192_p9), %v1321_v0  ;;  %v1323_v2 = vld [vmem:[%s1878_s2] sm:$0xff] (!%p192_p9)   ;;  %v1324_v27 = vld [vmem:[%s1878_s2 + $0x8] sm:$0xff] (!%p192_p9)   ;;  %v1326_v29 = vld [vmem:[%s1878_s2 + $0x18] sm:$0xff] (!%p192_p9)  }
   0xf   : > { %1197 = vmatpush3.bf16.msra.mxu0 (!%p192_p9), %v1321_v0  ;;  %1216 = vmatprep.subr.bf16.mxu1 (!%p192_p9), %v1323_v2  ;;  %v1327_v30 = vld [vmem:[%s1878_s2 + $0x20] sm:$0xff] (!%p192_p9)   ;;  %v1328_v31 = vld [vmem:[%s1878_s2 + $0x28] sm:$0xff] (!%p192_p9)   ;;  %v1329_v32 = vld [vmem:[%s1878_s2 + $0x30] sm:$0xff] (!%p192_p9)   ;;  %s1153_s25 = sshll.u32 (!%p192_p9), %s1521_s22, 11  ;;  %s1835_s22 = scalar_lea.sflag (!%p192_p9), [#allocation3], %s216_s14 }
  0x10   : > { %1198 = vmatprep.subr.bf16.mxu0 (!%p192_p9), %v1322_v1  ;;  %1217 = vmatpush3.bf16.msra.mxu1 (!%p192_p9), %v1323_v2  ;;  %v1330_v33 = vld [vmem:[%s1878_s2 + $0x38] sm:$0xff] (!%p192_p9)   ;;  %v1331_v34 = vld [vmem:[%s1879_s3] sm:$0xff] (!%p192_p9)   ;;  %s1467_s9 = smov (!%p192_p9), [#allocation2]  }
  0x11   : > { %1218 = vmatprep.subr.bf16.mxu1 (!%p192_p9), %v1324_v27  ;;  %s1407_s10 = sshll.u32 (!%p192_p9), %s1467_s9, 4  ;;  %s1408_s10 = int_to_ptr.vmem [resolvable:$false] %s1407_s10 }
  0x12   : > { %s1409_s11 = scalar_lea.vmem (!%p192_p9), %s1408_s10, 4096 }
  0x13   : > { %1199 = vmatpush3.bf16.msra.mxu0 (!%p192_p9), %v1322_v1 }
  0x14   : > { %1219 = vmatpush3.bf16.msra.mxu1 (!%p192_p9), %v1324_v27  ;;  %1248 = vmatprep.subr.bf16.mxu0 (!%p192_p9), %v1331_v34 }
  0x15   : > { %s1889_s7 = smov (!%p220_p10, %s1087_s7), 31  ;;  %1220 = vmatprep.subr.bf16.mxu1 %v1325_v28 }
  0x16   : > { %s1088_s12 = sshll.u32 %s1889_s7, 3  ;;  %s1826_s7 = scalar_lea.hbm %s1881_s5, %s1153_s25 }
  0x17   : > { %s1561_s15 = scalar_lea.vmem %s1876_s0, %s1088_s12 }
  0x18   : > { %v228_v3 = vld [vmem:[%s1561_s15] sm:$0xff]  ;;  %v229_v4 = vld [vmem:[%s1561_s15 + $0x8] sm:$0xff]  ;;  %v230_v5 = vld [vmem:[%s1561_s15 + $0x10] sm:$0xff]  ;;  %1221 = vmatpush3.bf16.msra.mxu1 %v1325_v28 }
  0x19   : > { %v244_v6 = vpack.c.bf16 %v229_v4, %v228_v3  ;;  %v231_v7 = vld [vmem:[%s1561_s15 + $0x18] sm:$0xff]  ;;  %v232_v8 = vld [vmem:[%s1561_s15 + $0x20] sm:$0xff]  ;;  %v233_v9 = vld [vmem:[%s1561_s15 + $0x28] sm:$0xff]  ;;  %1222 = vmatprep.subr.bf16.mxu1 %v1326_v29 }
  0x1a   : > { %v245_v10 = vpack.c.bf16 %v231_v7, %v230_v5  ;;  %v246_v11 = vpack.c.bf16 %v233_v9, %v232_v8  ;;  %v234_v12 = vld [vmem:[%s1561_s15 + $0x30] sm:$0xff]  ;;  %v235_v13 = vld [vmem:[%s1561_s15 + $0x38] sm:$0xff]  ;;  %v236_v14 = vld [vmem:[%s1561_s15 + $0x40] sm:$0xff] }
  0x1b   : > { %1200 = vmatprep.mubr.msk.bf16.mxu0 %vm268_vm0, %v244_v6  ;;  %v237_v15 = vld [vmem:[%s1561_s15 + $0x48] sm:$0xff]  ;;  %v247_v16 = vpack.c.bf16 %v235_v13, %v234_v12  ;;  %v238_v18 = vld [vmem:[%s1561_s15 + $0x50] sm:$0xff]  ;;  %v239_v19 = vld [vmem:[%s1561_s15 + $0x58] sm:$0xff] }
  0x1c   : > { %1201 = vmatmul.mubr.msk.bf16.vlgmr.msra.gmra.mrb[0].mxu0 %vm268_vm0, %v245_v10  ;;  %v248_v17 = vpack.c.bf16 %v237_v15, %v236_v14  ;;  %v240_v20 = vld [vmem:[%s1561_s15 + $0x60] sm:$0xff]  ;;  %v241_v21 = vld [vmem:[%s1561_s15 + $0x68] sm:$0xff]  ;;  %v249_v22 = vpack.c.bf16 %v239_v19, %v238_v18  ;;  %v242_v24 = vld [vmem:[%s1561_s15 + $0x70] sm:$0xff]  ;;  %1223 = vmatpush3.bf16.msra.mxu1 %v1326_v29 }
  0x1d   : > { %1204 = vmatprep.mubr.msk.bf16.mxu0 %vm268_vm0, %v246_v11  ;;  %v250_v23 = vpack.c.bf16 %v241_v21, %v240_v20  ;;  %v243_v25 = vld [vmem:[%s1561_s15 + $0x78] sm:$0xff]  ;;  %1224 = vmatprep.subr.bf16.mxu1 %v1327_v30  ;;  %s1086_s15 = sshll.u32 %s216_s14, 7 }
  0x1e   : > { %v251_v26 = vpack.c.bf16 %v243_v25, %v242_v24  ;;  %1249 = vmatpush3.bf16.msra.mxu0 %v1331_v34  ;;  %s1806_s23 = scalar_lea.vmem [#allocation2], %s1086_s15 }
  0x1f   : > { %s1020_s26 = sshll.u32 %s1806_s23, 4  ;;  %s1828_s26 = int_to_ptr.vmem [resolvable:$true] %s1020_s26 }
  0x20   : > { %1225 = vmatpush3.bf16.msra.mxu1 %v1327_v30  ;;  %s1403_s8 = scalar_lea.vmem %s1828_s26, 2048  ;;  %p1410_p0 = scmp.lt.s32.totalorder %s1828_s26, %s1408_s10 }
  0x21   : > { %1226 = vmatprep.subr.bf16.mxu1 %v1328_v31  ;;  %p1404_p11 = scmp.ne.s32.totalorder %s1828_s26, %s1403_s8  ;;  %p1411_p1 = scmp.lt.s32.totalorder %s1409_s11, %s1403_s8 }
  0x23   : > { %p1405_p12 = pnand %p1404_p11, %p1538_p5  ;;  %p1412_p2 = por %p1411_p1, %p1410_p0 }
  0x24   : > { %1205 = vmatmul.mubr.msk.bf16.gmra.mrb[4].mxu0 %vm268_vm0, %v247_v16  ;;  %1227 = vmatpush3.bf16.msra.mxu1 %v1328_v31 }
  0x25   : > { %1208 = vmatprep.mubr.msk.bf16.mxu0 %vm268_vm0, %v248_v17  ;;  %1228 = vmatprep.subr.bf16.mxu1 %v1329_v32  ;;  %p1406_p13 = pneg %p1405_p12 }
  0x27   : > { %p1413_p3 = pnand %p1412_p2, %p1406_p13 }
  0x28   : > { %1229 = vmatpush3.bf16.msra.mxu1 %v1329_v32 }
  0x29   : > { %1230 = vmatprep.subr.bf16.mxu1 %v1330_v33 }
  0x2c   : > { %1209 = vmatmul.mubr.msk.bf16.gmra.mrb[8].mxu0 %vm268_vm0, %v249_v22  ;;  %1231 = vmatpush3.bf16.msra.mxu1 %v1330_v33 }
  0x2d   : > { %1212 = vmatprep.mubr.msk.bf16.mxu0 %vm268_vm0, %v250_v23 }
  0x34   : > { %1213 = vmatmul.mubr.msk.bf16.gmra.mrb[12].mxu0 %vm268_vm0, %v251_v26 }
  0xef   : > { %v1202_v35 = vpop.f32.mrb[0].mxu0 }
  0xf0   : > { %v408_v36 = vmin.f32 %v1202_v35, 0.0  ;;  %v1611_v37 = vpop.f32.mrb[1].mxu0  ;;  %vm392_vm1 = vcmp.gt.f32.partialorder %v1202_v35, 0.0 }
  0xf1   : > { %v406_v38 = vmin.f32 %v1611_v37, 0.0  ;;  %v1203_v39 = vpop.f32.mrb[2].mxu0  ;;  %vm390_vm2 = vcmp.gt.f32.partialorder %v1611_v37, 0.0 }
  0xf2   : > { %v426_v40 = vmul.f32 1.442695, %v408_v36  ;;  %v409_v41 = vmin.f32 %v1203_v39, 0.0  ;;  %v1614_v42 = vpop.f32.mrb[3].mxu0  ;;  %vm393_vm3 = vcmp.gt.f32.partialorder %v1203_v39, 0.0 }
  0xf3   : > { %v422_v43 = vmul.f32 1.442695, %v406_v38  ;;  %v407_v44 = vmin.f32 %v1614_v42, 0.0  ;;  %vm391_vm4 = vcmp.gt.f32.partialorder %v1614_v42, 0.0 }
  0xf4   : > { %1339 = vpow2.f32 %v426_v40  ;;  %v428_v45 = vmul.f32 1.442695, %v409_v41 }
  0xf5   : > { %1341 = vpow2.f32 %v422_v43  ;;  %v424_v46 = vmul.f32 1.442695, %v407_v44 }
  0xf6   : > { %1343 = vpow2.f32 %v428_v45 }
  0xf7   : > { %1345 = vpow2.f32 %v424_v46  ;;  %v1617_v47 = vpop.f32.mrb[4].mxu0 }
  0xf8   : > { %v412_v48 = vmin.f32 %v1617_v47, 0.0  ;;  %v1620_v49 = vpop.f32.mrb[5].mxu0  ;;  %vm396_vm5 = vcmp.gt.f32.partialorder %v1617_v47, 0.0 }
  0xf9   : > { %v410_v50 = vmin.f32 %v1620_v49, 0.0  ;;  %v1623_v51 = vpop.f32.mrb[6].mxu0  ;;  %vm394_vm6 = vcmp.gt.f32.partialorder %v1620_v49, 0.0 }
  0xfa   : > { %v434_v52 = vmul.f32 1.442695, %v412_v48  ;;  %v413_v53 = vmin.f32 %v1623_v51, 0.0  ;;  %v1626_v54 = vpop.f32.mrb[7].mxu0  ;;  %vm397_vm7 = vcmp.gt.f32.partialorder %v1623_v51, 0.0 }
  0xfb   : > { %v430_v55 = vmul.f32 1.442695, %v410_v50  ;;  %v411_v56 = vmin.f32 %v1626_v54, 0.0  ;;  %vm395_vm8 = vcmp.gt.f32.partialorder %v1626_v54, 0.0 }
  0xfc   : > { %1347 = vpow2.f32 %v434_v52  ;;  %v436_v57 = vmul.f32 1.442695, %v413_v53 }
  0xfd   : > { %1349 = vpow2.f32 %v430_v55  ;;  %v432_v58 = vmul.f32 1.442695, %v411_v56 }
  0xfe   : > { %v1340_v59 = vpop.eup %1339  ;;  %1351 = vpow2.f32 %v436_v57 }
  0xff   : > { %v1342_v60 = vpop.eup %1341  ;;  %v1101_v61 = vadd.f32 -1.0, %v1340_v59  ;;  %1353 = vpow2.f32 %v432_v58  ;;  %v1629_v62 = vpop.f32.mrb[8].mxu0 }
 0x100   : > { %v1344_v63 = vpop.eup %1343  ;;  %v416_v0 = vmin.f32 %v1629_v62, 0.0  ;;  %v1632_v1 = vpop.f32.mrb[9].mxu0  ;;  %v1099_v10 = vadd.f32 -1.0, %v1342_v60  ;;  %vm400_vm9 = vcmp.gt.f32.partialorder %v1629_v62, 0.0 }
 0x101   : > { %v1346_v2 = vpop.eup %1345  ;;  %v472_v3 = vmul.f32 1.6732632, %v1101_v61  ;;  %v1102_v4 = vadd.f32 -1.0, %v1344_v63  ;;  %v414_v5 = vmin.f32 %v1632_v1, 0.0  ;;  %v1636_v6 = vpop.f32.mrb[10].mxu0  ;;  %vm398_vm10 = vcmp.gt.f32.partialorder %v1632_v1, 0.0 }
 0x102   : > { %v442_v7 = vmul.f32 1.442695, %v416_v0  ;;  %v417_v8 = vmin.f32 %v1636_v6, 0.0  ;;  %v1639_v9 = vpop.f32.mrb[11].mxu0  ;;  %v1100_v13 = vadd.f32 -1.0, %v1346_v2  ;;  %vm401_vm11 = vcmp.gt.f32.partialorder %v1636_v6, 0.0 }
 0x103   : > { %v473_v11 = vmul.f32 1.6732632, %v1102_v4  ;;  %v438_v12 = vmul.f32 1.442695, %v414_v5  ;;  %v488_v14 = vsel %vm392_vm1, %v1202_v35, %v472_v3  ;;  %v415_v16 = vmin.f32 %v1639_v9, 0.0 }
 0x104   : > { %1355 = vpow2.f32 %v442_v7  ;;  %v444_v15 = vmul.f32 1.442695, %v417_v8  ;;  %v470_v20 = vmul.f32 1.6732632, %v1099_v10  ;;  %v1647_v22 = vmul.f32 1.050701, %v488_v14 }
 0x105   : > { %v489_v17 = vsel %vm393_vm3, %v1203_v39, %v473_v11  ;;  %1357 = vpow2.f32 %v438_v12  ;;  %v440_v19 = vmul.f32 1.442695, %v415_v16  ;;  %v471_v25 = vmul.f32 1.6732632, %v1100_v13 }
 0x106   : > { %v1348_v18 = vpop.eup %1347  ;;  %1359 = vpow2.f32 %v444_v15  ;;  %v505_v27 = vmul.f32 1.050701, %v489_v17  ;;  %v486_v40 = vsel %vm390_vm2, %v1611_v37, %v470_v20  ;;  %vm399_vm12 = vcmp.gt.f32.partialorder %v1639_v9, 0.0 }
 0x107   : > { %v1350_v21 = vpop.eup %1349  ;;  %v1105_v23 = vadd.f32 -1.0, %v1348_v18  ;;  %v1649_v24 = vpop.f32.mrb[12].mxu0  ;;  %1361 = vpow2.f32 %v440_v19  ;;  %v487_v37 = vsel %vm391_vm4, %v1614_v42, %v471_v25  ;;  %v502_v42 = vmul.f32 1.050701, %v486_v40 }
 0x108   : > { %v1352_v26 = vpop.eup %1351  ;;  %v1103_v28 = vadd.f32 -1.0, %v1350_v21  ;;  %v420_v29 = vmin.f32 %v1649_v24, 0.0  ;;  %v1652_v30 = vpop.f32.mrb[13].mxu0  ;;  %v519_v3 = vpack.c.bf16 %v505_v27, %v1647_v22  ;;  %vm404_vm13 = vcmp.gt.f32.partialorder %v1649_v24, 0.0 }
 0x109   : > { %v1354_v31 = vpop.eup %1353  ;;  %v476_v32 = vmul.f32 1.6732632, %v1105_v23  ;;  %v1106_v33 = vadd.f32 -1.0, %v1352_v26  ;;  %v418_v34 = vmin.f32 %v1652_v30, 0.0  ;;  %v1656_v35 = vpop.f32.mrb[14].mxu0  ;;  %vm402_vm15 = vcmp.gt.f32.partialorder %v1652_v30, 0.0 }
 0x10a   : > { %v474_v36 = vmul.f32 1.6732632, %v1103_v28  ;;  %v1104_v38 = vadd.f32 -1.0, %v1354_v31  ;;  %v450_v39 = vmul.f32 1.442695, %v420_v29  ;;  %v421_v45 = vmin.f32 %v1656_v35, 0.0 }
 0x10b   : > { %v492_v41 = vsel %vm396_vm5, %v1617_v47, %v476_v32  ;;  %v477_v43 = vmul.f32 1.6732632, %v1106_v33  ;;  %v446_v44 = vmul.f32 1.442695, %v418_v34  ;;  %v1665_v46 = vpop.f32.mrb[15].mxu0  ;;  %vm405_vm14 = vcmp.gt.f32.partialorder %v1656_v35, 0.0 }
 0x10c   : > { %v490_v48 = vsel %vm394_vm6, %v1620_v49, %v474_v36  ;;  %v475_v50 = vmul.f32 1.6732632, %v1104_v38  ;;  %1363 = vpow2.f32 %v450_v39  ;;  %v508_v52 = vmul.f32 1.050701, %v492_v41 }
 0x10d   : > { %v493_v47 = vsel %vm397_vm7, %v1623_v51, %v477_v43  ;;  %1365 = vpow2.f32 %v446_v44  ;;  %v452_v53 = vmul.f32 1.442695, %v421_v45  ;;  %v506_v56 = vmul.f32 1.050701, %v490_v48 }
 0x10e   : > { %v1356_v55 = vpop.eup %1355  ;;  %v509_v57 = vmul.f32 1.050701, %v493_v47  ;;  %v491_v49 = vsel %vm395_vm8, %v1626_v54, %v475_v50  ;;  %v419_v58 = vmin.f32 %v1665_v46, 0.0  ;;  %v503_v51 = vmul.f32 1.050701, %v487_v37  ;;  %v1335_v50 = vld [vmem:[%s1879_s3 + $0x20] sm:$0xff]  }
 0x10f   : > { %v1358_v59 = vpop.eup %1357  ;;  %v507_v60 = vmul.f32 1.050701, %v491_v49  ;;  %v1109_v61 = vadd.f32 -1.0, %v1356_v55  ;;  %1367 = vpow2.f32 %v452_v53  ;;  %vm403_vm0 = vcmp.gt.f32.partialorder %v1665_v46, 0.0  ;;  %v1336_v37 = vld [vmem:[%s1879_s3 + $0x28] sm:$0xff]   ;;  %v1338_v47 = vld [vmem:[%s1879_s3 + $0x38] sm:$0xff]  }
 0x110   : > { %v1360_v63 = vpop.eup %1359  ;;  %v1107_v0 = vadd.f32 -1.0, %v1358_v59  ;;  %v448_v2 = vmul.f32 1.442695, %v419_v58  ;;  %v521_v8 = vpack.c.bf16 %v509_v57, %v508_v52  ;;  %v518_v11 = vpack.c.bf16 %v503_v51, %v502_v42  ;;  %v1337_v52 = vld [vmem:[%s1879_s3 + $0x30] sm:$0xff]  }
 0x111   : > { %v480_v4 = vmul.f32 1.6732632, %v1109_v61  ;;  %v1110_v5 = vadd.f32 -1.0, %v1360_v63  ;;  %v520_v7 = vpack.c.bf16 %v507_v60, %v506_v56  ;;  %v1362_v10 = vpop.eup %1361 }
 0x112   : > { %v478_v54 = vmul.f32 1.6732632, %v1107_v0  ;;  %1369 = vpow2.f32 %v448_v2  ;;  %v1108_v14 = vadd.f32 -1.0, %v1362_v10  ;;  %1232 = vmatprep.mubr.bf16.mxu1 %v518_v11 }
 0x113   : > { %v496_v12 = vsel %vm400_vm9, %v1629_v62, %v480_v4  ;;  %v481_v13 = vmul.f32 1.6732632, %v1110_v5  ;;  %1233 = vmatmul.mubr.bf16.vlgmr.msra.gmra.mrb[0].mxu1 %v519_v3 }
 0x114   : > { %v494_v15 = vsel %vm398_vm10, %v1632_v1, %v478_v54  ;;  %v479_v17 = vmul.f32 1.6732632, %v1108_v14  ;;  %v512_v19 = vmul.f32 1.050701, %v496_v12  ;;  %1236 = vmatprep.mubr.bf16.mxu1 %v520_v7 }
 0x115   : > { %v497_v16 = vsel %vm401_vm11, %v1636_v6, %v481_v13  ;;  %v510_v23 = vmul.f32 1.050701, %v494_v15 }
 0x116   : > { %v1364_v18 = vpop.eup %1363  ;;  %v513_v20 = vmul.f32 1.050701, %v497_v16  ;;  %v495_v21 = vsel %vm399_vm12, %v1639_v9, %v479_v17 }
 0x117   : > { %v1366_v62 = vpop.eup %1365  ;;  %v1113_v22 = vadd.f32 -1.0, %v1364_v18  ;;  %v511_v25 = vmul.f32 1.050701, %v495_v21 }
 0x118   : > { %v1111_v26 = vadd.f32 -1.0, %v1366_v62  ;;  %v523_v27 = vpack.c.bf16 %v513_v20, %v512_v19 }
 0x119   : > { %v1368_v28 = vpop.eup %1367  ;;  %v484_v1 = vmul.f32 1.6732632, %v1113_v22  ;;  %v522_v6 = vpack.c.bf16 %v511_v25, %v510_v23 }
 0x11a   : > { %v1114_v29 = vadd.f32 -1.0, %v1368_v28  ;;  %v482_v31 = vmul.f32 1.6732632, %v1111_v26 }
 0x11b   : > { %v500_v33 = vsel %vm404_vm13, %v1649_v24, %v484_v1  ;;  %1237 = vmatmul.mubr.bf16.gmra.mrb[4].mxu1 %v521_v8 }
 0x11c   : > { %v1370_v32 = vpop.eup %1369  ;;  %v485_v34 = vmul.f32 1.6732632, %v1114_v29  ;;  %1240 = vmatprep.mubr.bf16.mxu1 %v522_v6  ;;  %v516_v38 = vmul.f32 1.050701, %v500_v33  ;;  %v498_v39 = vsel %vm402_vm15, %v1652_v30, %v482_v31  ;;  %v1333_v30 = vld [vmem:[%s1879_s3 + $0x10] sm:$0xff]  }
 0x11d   : > { %v1112_v36 = vadd.f32 -1.0, %v1370_v32  ;;  %v514_v44 = vmul.f32 1.050701, %v498_v39 }
 0x11e   : > { %v501_v9 = vsel %vm405_vm14, %v1656_v35, %v485_v34  ;;  %v1332_v35 = vld [vmem:[%s1879_s3 + $0x8] sm:$0xff]  }
 0x11f   : > { %v517_v40 = vmul.f32 1.050701, %v501_v9  ;;  %v483_v41 = vmul.f32 1.6732632, %v1112_v36  ;;  %1250 = vmatprep.subr.bf16.mxu0 %v1332_v35 }
 0x120   : > { %1251 = vmatpush3.bf16.msra.mxu0 %v1332_v35 }
 0x121   : > { %v499_v43 = vsel %vm403_vm0, %v1665_v46, %v483_v41  ;;  %v525_v24 = vpack.c.bf16 %v517_v40, %v516_v38  ;;  %1252 = vmatprep.subr.bf16.mxu0 %v1333_v30  ;;  %v1334_v46 = vld [vmem:[%s1879_s3 + $0x18] sm:$0xff]  }
 0x122   : > { %v515_v45 = vmul.f32 1.050701, %v499_v43 }
 0x123   : > { %1241 = vmatmul.mubr.bf16.gmra.mrb[8].mxu1 %v523_v27 }
 0x124   : > { %v524_v48 = vpack.c.bf16 %v515_v45, %v514_v44  ;;  %1253 = vmatpush3.bf16.msra.mxu0 %v1333_v30 }
 0x125   : > { %1254 = vmatprep.subr.bf16.mxu0 %v1334_v46 }
 0x126   : > { %1244 = vmatprep.mubr.bf16.mxu1 %v524_v48 }
 0x128   : > { %1255 = vmatpush3.bf16.msra.mxu0 %v1334_v46 }
 0x129   : > { %1256 = vmatprep.subr.bf16.mxu0 %v1335_v50 }
 0x12b   : > { %1245 = vmatmul.mubr.bf16.gmra.mrb[12].mxu1 %v525_v24 }
 0x12c   : > { %1257 = vmatpush3.bf16.msra.mxu0 %v1335_v50 }
 0x12d   : > { %1258 = vmatprep.subr.bf16.mxu0 %v1336_v37 }
 0x130   : > { %1259 = vmatpush3.bf16.msra.mxu0 %v1336_v37 }
 0x131   : > { %1260 = vmatprep.subr.bf16.mxu0 %v1337_v52 }
 0x134   : > { %1261 = vmatpush3.bf16.msra.mxu0 %v1337_v52 }
 0x135   : > { %1262 = vmatprep.subr.bf16.mxu0 %v1338_v47 }
 0x138   : > { %1263 = vmatpush3.bf16.msra.mxu0 %v1338_v47 }
 0x1e6   : > { %v1234_v53 = vpop.f32.mrb[0].mxu1 }
 0x1e7   : > { %v705_v55 = vmin.f32 %v1234_v53, 0.0  ;;  %v1718_v56 = vpop.f32.mrb[1].mxu1  ;;  %vm689_vm1 = vcmp.gt.f32.partialorder %v1234_v53, 0.0 }
 0x1e8   : > { %v703_v57 = vmin.f32 %v1718_v56, 0.0  ;;  %v1235_v49 = vpop.f32.mrb[2].mxu1  ;;  %vm687_vm2 = vcmp.gt.f32.partialorder %v1718_v56, 0.0 }
 0x1e9   : > { %v723_v58 = vmul.f32 1.442695, %v705_v55  ;;  %v706_v59 = vmin.f32 %v1235_v49, 0.0  ;;  %v1721_v60 = vpop.f32.mrb[3].mxu1  ;;  %vm690_vm3 = vcmp.gt.f32.partialorder %v1235_v49, 0.0 }
 0x1ea   : > { %v719_v61 = vmul.f32 1.442695, %v703_v57  ;;  %v704_v42 = vmin.f32 %v1721_v60, 0.0  ;;  %vm688_vm4 = vcmp.gt.f32.partialorder %v1721_v60, 0.0 }
 0x1eb   : > { %1371 = vpow2.f32 %v723_v58  ;;  %v725_v63 = vmul.f32 1.442695, %v706_v59 }
 0x1ec   : > { %1373 = vpow2.f32 %v719_v61  ;;  %v721_v0 = vmul.f32 1.442695, %v704_v42 }
 0x1ed   : > { %1375 = vpow2.f32 %v725_v63 }
 0x1ee   : > { %1377 = vpow2.f32 %v721_v0  ;;  %v1724_v2 = vpop.f32.mrb[4].mxu1 }
 0x1ef   : > { %v709_v51 = vmin.f32 %v1724_v2, 0.0  ;;  %v1727_v3 = vpop.f32.mrb[5].mxu1  ;;  %vm693_vm5 = vcmp.gt.f32.partialorder %v1724_v2, 0.0 }
 0x1f0   : > { %v707_v4 = vmin.f32 %v1727_v3, 0.0  ;;  %v1730_v5 = vpop.f32.mrb[6].mxu1  ;;  %vm691_vm6 = vcmp.gt.f32.partialorder %v1727_v3, 0.0 }
 0x1f1   : > { %v731_v7 = vmul.f32 1.442695, %v709_v51  ;;  %v710_v8 = vmin.f32 %v1730_v5, 0.0  ;;  %v1733_v10 = vpop.f32.mrb[7].mxu1  ;;  %vm694_vm7 = vcmp.gt.f32.partialorder %v1730_v5, 0.0 }
 0x1f2   : > { %v727_v54 = vmul.f32 1.442695, %v707_v4  ;;  %v708_v11 = vmin.f32 %v1733_v10, 0.0  ;;  %vm692_vm8 = vcmp.gt.f32.partialorder %v1733_v10, 0.0 }
 0x1f3   : > { %1379 = vpow2.f32 %v731_v7  ;;  %v733_v12 = vmul.f32 1.442695, %v710_v8 }
 0x1f4   : > { %1381 = vpow2.f32 %v727_v54  ;;  %v729_v13 = vmul.f32 1.442695, %v708_v11 }
 0x1f5   : > { %v1372_v14 = vpop.eup %1371  ;;  %1383 = vpow2.f32 %v733_v12 }
 0x1f6   : > { %v1374_v15 = vpop.eup %1373  ;;  %v1125_v16 = vadd.f32 -1.0, %v1372_v14  ;;  %1385 = vpow2.f32 %v729_v13  ;;  %v1736_v17 = vpop.f32.mrb[8].mxu1 }
 0x1f7   : > { %v1376_v18 = vpop.eup %1375  ;;  %v1123_v19 = vadd.f32 -1.0, %v1374_v15  ;;  %v713_v20 = vmin.f32 %v1736_v17, 0.0  ;;  %v1739_v62 = vpop.f32.mrb[9].mxu1  ;;  %vm697_vm9 = vcmp.gt.f32.partialorder %v1736_v17, 0.0 }
 0x1f8   : > { %v1378_v21 = vpop.eup %1377  ;;  %v769_v22 = vmul.f32 1.6732632, %v1125_v16  ;;  %v1126_v23 = vadd.f32 -1.0, %v1376_v18  ;;  %v711_v25 = vmin.f32 %v1739_v62, 0.0  ;;  %v1742_v26 = vpop.f32.mrb[10].mxu1  ;;  %vm695_vm11 = vcmp.gt.f32.partialorder %v1739_v62, 0.0 }
 0x1f9   : > { %v1124_v27 = vadd.f32 -1.0, %v1378_v21  ;;  %v739_v28 = vmul.f32 1.442695, %v713_v20  ;;  %v714_v31 = vmin.f32 %v1742_v26, 0.0  ;;  %v1746_v32 = vpop.f32.mrb[11].mxu1  ;;  %vm698_vm10 = vcmp.gt.f32.partialorder %v1742_v26, 0.0 }
 0x1fa   : > { %v785_v1 = vsel %vm689_vm1, %v1234_v53, %v769_v22  ;;  %v770_v29 = vmul.f32 1.6732632, %v1126_v23  ;;  %v735_v6 = vmul.f32 1.442695, %v711_v25  ;;  %v767_v33 = vmul.f32 1.6732632, %v1123_v19 }
 0x1fb   : > { %1387 = vpow2.f32 %v739_v28  ;;  %v768_v36 = vmul.f32 1.6732632, %v1124_v27  ;;  %v741_v9 = vmul.f32 1.442695, %v714_v31  ;;  %v801_v39 = vmul.f32 1.050701, %v785_v1 }
 0x1fc   : > { %v786_v34 = vsel %vm690_vm3, %v1235_v49, %v770_v29  ;;  %1389 = vpow2.f32 %v735_v6  ;;  %v712_v41 = vmin.f32 %v1746_v32, 0.0  ;;  %v783_v48 = vsel %vm687_vm2, %v1718_v56, %v767_v33 }
 0x1fd   : > { %v1380_v38 = vpop.eup %1379  ;;  %v802_v40 = vmul.f32 1.050701, %v786_v34  ;;  %1391 = vpow2.f32 %v741_v9  ;;  %v784_v52 = vsel %vm688_vm4, %v1721_v60, %v768_v36  ;;  %v799_v61 = vmul.f32 1.050701, %v783_v48 }
 0x1fe   : > { %v1382_v43 = vpop.eup %1381  ;;  %v1129_v24 = vadd.f32 -1.0, %v1380_v38  ;;  %v1754_v44 = vpop.f32.mrb[12].mxu1  ;;  %v737_v46 = vmul.f32 1.442695, %v712_v41  ;;  %v800_v0 = vmul.f32 1.050701, %v784_v52 }
 0x1ff   : > { %v1384_v45 = vpop.eup %1383  ;;  %v816_v35 = vpack.c.bf16 %v802_v40, %v801_v39  ;;  %v1127_v30 = vadd.f32 -1.0, %v1382_v43  ;;  %v1759_v50 = vpop.f32.mrb[13].mxu1  ;;  %v717_v55 = vmin.f32 %v1754_v44, 0.0  ;;  %vm696_vm12 = vcmp.gt.f32.partialorder %v1746_v32, 0.0 }
 0x200   : > { %v1386_v37 = vpop.eup %1385  ;;  %v773_v47 = vmul.f32 1.6732632, %v1129_v24  ;;  %v1130_v53 = vadd.f32 -1.0, %v1384_v45  ;;  %v1765_v57 = vpop.f32.mrb[14].mxu1  ;;  %1393 = vpow2.f32 %v737_v46  ;;  %v715_v56 = vmin.f32 %v1759_v50, 0.0 }
 0x201   : > { %v771_v49 = vmul.f32 1.6732632, %v1127_v30  ;;  %v1128_v58 = vadd.f32 -1.0, %v1386_v37  ;;  %v1768_v59 = vpop.f32.mrb[15].mxu1  ;;  %v747_v60 = vmul.f32 1.442695, %v717_v55  ;;  %v815_v21 = vpack.c.bf16 %v800_v0, %v799_v61 }
 0x202   : > { %v789_v42 = vsel %vm693_vm5, %v1724_v2, %v773_v47  ;;  %v774_v63 = vmul.f32 1.6732632, %v1130_v53  ;;  %v743_v7 = vmul.f32 1.442695, %v715_v56  ;;  %v718_v11 = vmin.f32 %v1765_v57, 0.0 }
 0x203   : > { %v787_v51 = vsel %vm691_vm6, %v1727_v3, %v771_v49  ;;  %v772_v4 = vmul.f32 1.6732632, %v1128_v58  ;;  %v805_v8 = vmul.f32 1.050701, %v789_v42  ;;  %1395 = vpow2.f32 %v747_v60  ;;  %1264 = vmatprep.mubr.bf16.mxu0 %v815_v21 }
 0x204   : > { %v790_v54 = vsel %vm694_vm7, %v1730_v5, %v774_v63  ;;  %v803_v13 = vmul.f32 1.050701, %v787_v51  ;;  %1397 = vpow2.f32 %v743_v7  ;;  %v749_v18 = vmul.f32 1.442695, %v718_v11  ;;  %1265 = vmatmul.mubr.bf16.vlgmr.msra.gmra.mrb[16].mxu0 %v816_v35 }
 0x205   : > { %v1388_v12 = vpop.eup %1387  ;;  %v806_v2 = vmul.f32 1.050701, %v790_v54  ;;  %v788_v14 = vsel %vm692_vm8, %v1733_v10, %v772_v4  ;;  %v716_v19 = vmin.f32 %v1768_v59, 0.0  ;;  %vm701_vm13 = vcmp.gt.f32.partialorder %v1754_v44, 0.0 }
 0x206   : > { %v1390_v15 = vpop.eup %1389  ;;  %v804_v3 = vmul.f32 1.050701, %v788_v14  ;;  %v1133_v16 = vadd.f32 -1.0, %v1388_v12  ;;  %1399 = vpow2.f32 %v749_v18  ;;  %vm699_vm14 = vcmp.gt.f32.partialorder %v1759_v50, 0.0 }
 0x207   : > { %v1131_v20 = vadd.f32 -1.0, %v1390_v15  ;;  %v818_v5 = vpack.c.bf16 %v806_v2, %v805_v8  ;;  %v1392_v22 = vpop.eup %1391  ;;  %v745_v25 = vmul.f32 1.442695, %v716_v19  ;;  %vm702_vm15 = vcmp.gt.f32.partialorder %v1765_v57, 0.0 }
 0x208   : > { %v777_v23 = vmul.f32 1.6732632, %v1133_v16  ;;  %v817_v27 = vpack.c.bf16 %v804_v3, %v803_v13  ;;  %v1134_v28 = vadd.f32 -1.0, %v1392_v22  ;;  %vm700_vm0 = vcmp.gt.f32.partialorder %v1768_v59, 0.0 }
 0x209   : > { %v775_v10 = vmul.f32 1.6732632, %v1131_v20  ;;  %1401 = vpow2.f32 %v745_v25 }
 0x20a   : > { %v1394_v1 = vpop.eup %1393  ;;  %v793_v29 = vsel %vm697_vm9, %v1736_v17, %v777_v23  ;;  %v778_v6 = vmul.f32 1.6732632, %v1134_v28  ;;  %1268 = vmatprep.mubr.bf16.mxu0 %v817_v27 }
 0x20b   : > { %v1132_v31 = vadd.f32 -1.0, %v1394_v1  ;;  %v809_v36 = vmul.f32 1.050701, %v793_v29  ;;  %v791_v9 = vsel %vm695_vm11, %v1739_v62, %v775_v10 }
 0x20c   : > { %v794_v33 = vsel %vm698_vm10, %v1742_v26, %v778_v6  ;;  %v807_v45 = vmul.f32 1.050701, %v791_v9  ;;  %1269 = vmatmul.mubr.bf16.gmra.mrb[20].mxu0 %v818_v5 }
 0x20d   : > { %v1396_v34 = vpop.eup %1395  ;;  %v810_v38 = vmul.f32 1.050701, %v794_v33  ;;  %v776_v39 = vmul.f32 1.6732632, %v1132_v31 }
 0x20e   : > { %v1398_v40 = vpop.eup %1397  ;;  %v1137_v41 = vadd.f32 -1.0, %v1396_v34 }
 0x20f   : > { %v792_v17 = vsel %vm696_vm12, %v1746_v32, %v776_v39  ;;  %v1135_v43 = vadd.f32 -1.0, %v1398_v40  ;;  %v820_v24 = vpack.c.bf16 %v810_v38, %v809_v36 }
 0x210   : > { %v808_v48 = vmul.f32 1.050701, %v792_v17  ;;  %v781_v35 = vmul.f32 1.6732632, %v1137_v41  ;;  %v1400_v30 = vpop.eup %1399 }
 0x211   : > { %v779_v26 = vmul.f32 1.6732632, %v1135_v43  ;;  %v1138_v46 = vadd.f32 -1.0, %v1400_v30 }
 0x212   : > { %v819_v37 = vpack.c.bf16 %v808_v48, %v807_v45  ;;  %v797_v62 = vsel %vm701_vm13, %v1754_v44, %v781_v35 }
 0x213   : > { %v1402_v52 = vpop.eup %1401  ;;  %v782_v47 = vmul.f32 1.6732632, %v1138_v46  ;;  %v795_v32 = vsel %vm699_vm14, %v1759_v50, %v779_v26  ;;  %v813_v58 = vmul.f32 1.050701, %v797_v62  ;;  %v1139_v50 = vld [vmem:[%s1880_s4] ss:$0 sm:$0xff] }
 0x214   : > { %v1136_v53 = vadd.f32 -1.0, %v1402_v52  ;;  %1272 = vmatprep.mubr.bf16.mxu0 %v819_v37  ;;  %v811_v61 = vmul.f32 1.050701, %v795_v32 }
 0x215   : > { %v798_v55 = vsel %vm702_vm15, %v1765_v57, %v782_v47  ;;  %1273 = vmatmul.mubr.bf16.gmra.mrb[24].mxu0 %v820_v24 }
 0x216   : > { %v780_v49 = vmul.f32 1.6732632, %v1136_v53  ;;  %v814_v56 = vmul.f32 1.050701, %v798_v55 }
 0x218   : > { %v796_v44 = vsel %vm700_vm0, %v1768_v59, %v780_v49  ;;  %v822_v63 = vpack.c.bf16 %v814_v56, %v813_v58 }
 0x219   : > { %v812_v42 = vmul.f32 1.050701, %v796_v44 }
 0x21b   : > { %v821_v60 = vpack.c.bf16 %v812_v42, %v811_v61 }
 0x21d   : > { %1276 = vmatprep.mubr.bf16.mxu0 %v821_v60 }
 0x21e   : > { %1277 = vmatmul.mubr.bf16.gmra.mrb[28].mxu0 %v822_v63 }
 0x2d7   : > { %v1266_v57 = vpop.f32.mrb[16].mxu0 }
 0x2d8   : > { %v936_v0 = vadd.f32 %v1266_v57, %v1139_v50  ;;  %v927_v51 = vpop.f32.mrb[17].mxu0 }
 0x2d9   : > { %v928_v4 = vadd.f32 %v1139_v50, %v927_v51  ;;  %v1267_v7 = vpop.f32.mrb[18].mxu0 }
 0x2da   : > { %992 = vst [vmem:[%s1806_s23 + $0x10] sm:$0xff] %v936_v0  ;;  %v939_v59 = vadd.f32 %v1267_v7, %v1139_v50  ;;  %v930_v8 = vpop.f32.mrb[19].mxu0 }
 0x2db   : > { %990 = vst [vmem:[%s1806_s23] sm:$0xff] %v928_v4  ;;  %v931_v54 = vadd.f32 %v1139_v50, %v930_v8 }
 0x2dc   : > { %993 = vst [vmem:[%s1806_s23 + $0x18] sm:$0xff] %v939_v59 }
 0x2dd   : > { %991 = vst [vmem:[%s1806_s23 + $0x8] sm:$0xff] %v931_v54 }
 0x2df   : > { %v1270_v11 = vpop.f32.mrb[20].mxu0 }
 0x2e0   : > { %v952_v12 = vadd.f32 %v1270_v11, %v1139_v50  ;;  %v943_v13 = vpop.f32.mrb[21].mxu0 }
 0x2e1   : > { %v944_v2 = vadd.f32 %v1139_v50, %v943_v13  ;;  %v1271_v14 = vpop.f32.mrb[22].mxu0 }
 0x2e2   : > { %996 = vst [vmem:[%s1806_s23 + $0x30] sm:$0xff] %v952_v12  ;;  %v955_v15 = vadd.f32 %v1271_v14, %v1139_v50  ;;  %v946_v3 = vpop.f32.mrb[23].mxu0 }
 0x2e3   : > { %994 = vst [vmem:[%s1806_s23 + $0x20] sm:$0xff] %v944_v2  ;;  %v947_v16 = vadd.f32 %v1139_v50, %v946_v3 }
 0x2e4   : > { %997 = vst [vmem:[%s1806_s23 + $0x38] sm:$0xff] %v955_v15 }
 0x2e5   : > { %995 = vst [vmem:[%s1806_s23 + $0x28] sm:$0xff] %v947_v16 }
 0x2e8   : > { %v1274_v18 = vpop.f32.mrb[24].mxu0 }
 0x2e9   : > { %v968_v19 = vadd.f32 %v1274_v18, %v1139_v50  ;;  %v959_v20 = vpop.f32.mrb[25].mxu0 }
 0x2ea   : > { %v960_v21 = vadd.f32 %v1139_v50, %v959_v20  ;;  %v1275_v5 = vpop.f32.mrb[26].mxu0 }
 0x2eb   : > { %1000 = vst [vmem:[%s1806_s23 + $0x50] sm:$0xff] %v968_v19  ;;  %v971_v22 = vadd.f32 %v1275_v5, %v1139_v50  ;;  %v962_v23 = vpop.f32.mrb[27].mxu0 }
 0x2ec   : > { %998 = vst [vmem:[%s1806_s23 + $0x40] sm:$0xff] %v960_v21  ;;  %v963_v25 = vadd.f32 %v1139_v50, %v962_v23 }
 0x2ed   : > { %1001 = vst [vmem:[%s1806_s23 + $0x58] sm:$0xff] %v971_v22 }
 0x2ee   : > { %999 = vst [vmem:[%s1806_s23 + $0x48] sm:$0xff] %v963_v25 }
 0x2f1   : > { %v1278_v27 = vpop.f32.mrb[28].mxu0 }
 0x2f2   : > { %v984_v28 = vadd.f32 %v1278_v27, %v1139_v50  ;;  %v975_v10 = vpop.f32.mrb[29].mxu0 }
 0x2f3   : > { %v976_v1 = vadd.f32 %v1139_v50, %v975_v10  ;;  %v1279_v29 = vpop.f32.mrb[30].mxu0 }
 0x2f4   : > { %1004 = vst [vmem:[%s1806_s23 + $0x70] sm:$0xff] %v984_v28  ;;  %v987_v6 = vadd.f32 %v1279_v29, %v1139_v50  ;;  %v978_v31 = vpop.f32.mrb[31].mxu0 }
 0x2f5   : > { %1002 = vst [vmem:[%s1806_s23 + $0x60] sm:$0xff] %v976_v1  ;;  %v979_v33 = vadd.f32 %v1139_v50, %v978_v31 }
 0x2f6   : > { %1005 = vst [vmem:[%s1806_s23 + $0x78] sm:$0xff] %v987_v6 }
 0x2f7   : > { %1003 = vst [vmem:[%s1806_s23 + $0x68] sm:$0xff] %v979_v33 }
 0x2f8   : > { %1416 = shalt.err (!%p1413_p3)
}
 0x2f9   : > { %s1417_s12 = scalar_lea.hbm %s1826_s7, 2048  ;;  %s1421_s15 = scalar_lea.hbm %s1881_s5, 4096 }
 0x2fa   : > { %p1418_p4 = scmp.ne.s32.totalorder %s1826_s7, %s1417_s12  ;;  %p1422_p9 = scmp.lt.u32.totalorder %s1826_s7, %s1881_s5 }
 0x2fb   : > { %p1423_p10 = scmp.lt.u32.totalorder %s1421_s15, %s1417_s12  ;;  %p1425_p12 = scmp.lt.u32.totalorder %s1417_s12, %s1826_s7 }
 0x2fc   : > { %p1419_p7 = pnand %p1418_p4, %p1538_p5 }
 0x2fd   : > { %p1424_p11 = por %p1423_p10, %p1422_p9 }
 0x2fe   : > { %p1420_p8 = pneg %p1419_p7 }
 0x2ff   : > { %p1426_p13 = por %p1425_p12, %p1424_p11 }
 0x301   : > { %p1427_p0 = pnand %p1426_p13, %p1420_p8 }
 0x303   : > { %1430 = shalt.err (!%p1427_p0)
}
 0x304   : > { %s1468_s23 = smov 128   ;;  %s1469_s25 = smov 8  }
 0x305   : > { %1280 = dma.vmem_to_hbm [thread:$0]  (%p1538_p5), %s1828_s26, 2048, %s1826_s7, %s1835_s22, %s1468_s23, %s1468_s23, %s1469_s25  }
 0x306 PF: > { %p1286_p1 = scmp.ge.s32.totalorder %s1465_s21, 2  ;;  %s1035_s30 = sand.u32 1, %s1453_s18  }
 0x307   : > { %s1036_s6 = scalar_lea.sflag [#allocation3], %s1035_s30 }
 0x308   : > { %p1283_p2 = pnand %p1286_p1, %p1542_p6 }
 0x30a   : > { %1448 = dma.done.wait (!%p1283_p2), %s1036_s6, 2048  }
 0x30b   : > { %1450 = vsyncadd (!%p1283_p2), %s1036_s6, 4294965248  ;;  %p15_p3 = scmp.ge.s32.totalorder %s1525_s24, 4   ;;  %s1884_s18 = smov %s1457_s19 }
 0x30c   : > { %s1885_s19 = smov %s1461_s20  ;;  %s1886_s20 = smov %s1536_s27 }
 0x30d   : > { %s1887_s21 = smov %s1525_s24  ;;  %17 = sbr.rel (!%p15_p3) target bundleno = 3 (0x3), region = 75 }
 0x314   :  { %1041 = vsyncpa [#allocation3], 1 }
 0x315   :  { %1043 = vsyncpa [#allocation3 + $0x1], 1 }

// kernel: tpu_custom_call.1
= control target key start
LH: loop header
LB: loop body
LE: loop exit
PB: predicated region body
PF: predicated region fallthrough
CT: control target
= control target key end

     0   :  { %10 = vsyncpa [#allocation3], 0  ;;  %s1876_s0 = inlined_call_operand.vmem [shape: f32[256,32], index: 0, kind: input, shape index: {}]   ;;  %s1877_s1 = inlined_call_operand.vmem [shape: bf16[32,128], index: 1, kind: input, shape index: {}]   ;;  %s1878_s2 = inlined_call_operand.vmem [shape: bf16[128,128], index: 2, kind: input, shape index: {}]   ;;  %s1879_s3 = inlined_call_operand.vmem [shape: bf16[128,128], index: 3, kind: input, shape index: {}]   ;;  %s1880_s4 = inlined_call_operand.vmem [shape: f32[1,128], index: 4, kind: input, shape index: {}]   ;;  %s1881_s5 = inlined_call_operand.hbm [shape: f32[256,128], index: 5, kind: output, shape index: {}]  }
   0x1   :  { %12 = vsyncpa [#allocation3 + $0x1], 0  ;;  %s1500_s18 = smov 0   ;;  %s1502_s19 = smov 0  }
   0x2   :  { %s1504_s20 = smov 0   ;;  %s1506_s21 = smov 0  }
   0x3 LB: > { %s1521_s22 = sadd.s32 4294967295, %s1465_s21   ;;  %s1082_s23 = sadd.s32 4294967294, %s1465_s21   ;;  %s1465_s21 = sphi %s1506_s21, %s1887_s21   ;;  %s1461_s20 = sphi %s1504_s20, %s1886_s20   ;;  %s1457_s19 = sphi %s1502_s19, %s1885_s19   ;;  %s1453_s18 = sphi %s1500_s18, %s1884_s18  }
   0x4   : > { %s1525_s24 = sadd.s32 1, %s1465_s21   ;;  %s135_s25 = sadd.s32 1, %s1461_s20 }
   0x5   : > { %s132_s26 = ssub.s32 %s1465_s21, %s1525_s24  ;;  %p145_p0 = scmp.ne.s32.totalorder %s1461_s20, %s1457_s19 }
   0x6   : > { %p133_p1 = scmp.eq.s32.totalorder %s132_s26, 0  ;;  %p146_p2 = scmp.eq.s32.totalorder %s1521_s22, 1 }
   0x7   : > { %p151_p3 = scmp.ne.s32.totalorder %s1457_s19, %s1453_s18  ;;  %p152_p4 = scmp.eq.s32.totalorder %s1082_s23, 1 }
   0x8   : > { %s1536_s27 = scalar_select %p133_p1, %s1461_s20, %s135_s25  }
   0x9   : > { %p1538_p5 = por %p146_p2, %p145_p0  ;;  %p1542_p6 = por %p152_p4, %p151_p3 }
   0xa   : > { %p1085_p7 = scmp.ge.s32.totalorder %s1465_s21, 1  ;;  %p191_p8 = scmp.lt.s32.totalorder %s1465_s21, 3 }
   0xc   : > { %p192_p9 = pnand %p1085_p7, %p191_p8 }
   0xd   : > { %v1321_v0 = vld [vmem:[%s1877_s1] sm:$0xff] (!%p192_p9)   ;;  %s1087_s7 = sshll.u32 (!%p192_p9), %s1521_s22, 4  ;;  %v1322_v1 = vld [vmem:[%s1877_s1 + $0x8] sm:$0xff] (!%p192_p9)   ;;  %vm268_vm0 = vcmask (!%p192_p9), 261120   ;;  %v1325_v28 = vld [vmem:[%s1878_s2 + $0x10] sm:$0xff] (!%p192_p9)   ;;  %s216_s14 = sand.u32 (!%p192_p9), 1, %s1457_s19  }
   0xe   : > { %195 = sbr.rel (%p192_p9) target bundleno = 774 (0x306), region = 40  ;;  %p220_p10 = scmp.lt.s32.totalorder (!%p192_p9), %s1087_s7, 31  ;;  %1196 = vmatprep.subr.bf16.mxu0 (!%p192_p9), %v1321_v0  ;;  %v1323_v2 = vld [vmem:[%s1878_s2] sm:$0xff] (!%p192_p9)   ;;  %v1324_v27 = vld [vmem:[%s1878_s2 + $0x8] sm:$0xff] (!%p192_p9)   ;;  %v1326_v29 = vld [vmem:[%s1878_s2 + $0x18] sm:$0xff] (!%p192_p9)  }
   0xf   : > { %1197 = vmatpush3.bf16.msra.mxu0 (!%p192_p9), %v1321_v0  ;;  %1216 = vmatprep.subr.bf16.mxu1 (!%p192_p9), %v1323_v2  ;;  %v1327_v30 = vld [vmem:[%s1878_s2 + $0x20] sm:$0xff] (!%p192_p9)   ;;  %v1328_v31 = vld [vmem:[%s1878_s2 + $0x28] sm:$0xff] (!%p192_p9)   ;;  %v1329_v32 = vld [vmem:[%s1878_s2 + $0x30] sm:$0xff] (!%p192_p9)   ;;  %s1153_s25 = sshll.u32 (!%p192_p9), %s1521_s22, 11  ;;  %s1835_s22 = scalar_lea.sflag (!%p192_p9), [#allocation3], %s216_s14 }
  0x10   : > { %1198 = vmatprep.subr.bf16.mxu0 (!%p192_p9), %v1322_v1  ;;  %1217 = vmatpush3.bf16.msra.mxu1 (!%p192_p9), %v1323_v2  ;;  %v1330_v33 = vld [vmem:[%s1878_s2 + $0x38] sm:$0xff] (!%p192_p9)   ;;  %v1331_v34 = vld [vmem:[%s1879_s3] sm:$0xff] (!%p192_p9)   ;;  %s1467_s9 = smov (!%p192_p9), [#allocation2]  }
  0x11   : > { %1218 = vmatprep.subr.bf16.mxu1 (!%p192_p9), %v1324_v27  ;;  %s1407_s10 = sshll.u32 (!%p192_p9), %s1467_s9, 4  ;;  %s1408_s10 = int_to_ptr.vmem [resolvable:$false] %s1407_s10 }
  0x12   : > { %s1409_s11 = scalar_lea.vmem (!%p192_p9), %s1408_s10, 4096 }
  0x13   : > { %1199 = vmatpush3.bf16.msra.mxu0 (!%p192_p9), %v1322_v1 }
  0x14   : > { %1219 = vmatpush3.bf16.msra.mxu1 (!%p192_p9), %v1324_v27  ;;  %1248 = vmatprep.subr.bf16.mxu0 (!%p192_p9), %v1331_v34 }
  0x15   : > { %s1889_s7 = smov (!%p220_p10, %s1087_s7), 31  ;;  %1220 = vmatprep.subr.bf16.mxu1 %v1325_v28 }
  0x16   : > { %s1088_s12 = sshll.u32 %s1889_s7, 3  ;;  %s1826_s7 = scalar_lea.hbm %s1881_s5, %s1153_s25 }
  0x17   : > { %s1561_s15 = scalar_lea.vmem %s1876_s0, %s1088_s12 }
  0x18   : > { %v228_v3 = vld [vmem:[%s1561_s15] sm:$0xff]  ;;  %v229_v4 = vld [vmem:[%s1561_s15 + $0x8] sm:$0xff]  ;;  %v230_v5 = vld [vmem:[%s1561_s15 + $0x10] sm:$0xff]  ;;  %1221 = vmatpush3.bf16.msra.mxu1 %v1325_v28 }
  0x19   : > { %v244_v6 = vpack.c.bf16 %v229_v4, %v228_v3  ;;  %v231_v7 = vld [vmem:[%s1561_s15 + $0x18] sm:$0xff]  ;;  %v232_v8 = vld [vmem:[%s1561_s15 + $0x20] sm:$0xff]  ;;  %v233_v9 = vld [vmem:[%s1561_s15 + $0x28] sm:$0xff]  ;;  %1222 = vmatprep.subr.bf16.mxu1 %v1326_v29 }
  0x1a   : > { %v245_v10 = vpack.c.bf16 %v231_v7, %v230_v5  ;;  %v246_v11 = vpack.c.bf16 %v233_v9, %v232_v8  ;;  %v234_v12 = vld [vmem:[%s1561_s15 + $0x30] sm:$0xff]  ;;  %v235_v13 = vld [vmem:[%s1561_s15 + $0x38] sm:$0xff]  ;;  %v236_v14 = vld [vmem:[%s1561_s15 + $0x40] sm:$0xff] }
  0x1b   : > { %1200 = vmatprep.mubr.msk.bf16.mxu0 %vm268_vm0, %v244_v6  ;;  %v237_v15 = vld [vmem:[%s1561_s15 + $0x48] sm:$0xff]  ;;  %v247_v16 = vpack.c.bf16 %v235_v13, %v234_v12  ;;  %v238_v18 = vld [vmem:[%s1561_s15 + $0x50] sm:$0xff]  ;;  %v239_v19 = vld [vmem:[%s1561_s15 + $0x58] sm:$0xff] }
  0x1c   : > { %1201 = vmatmul.mubr.msk.bf16.vlgmr.msra.gmra.mrb[0].mxu0 %vm268_vm0, %v245_v10  ;;  %v248_v17 = vpack.c.bf16 %v237_v15, %v236_v14  ;;  %v240_v20 = vld [vmem:[%s1561_s15 + $0x60] sm:$0xff]  ;;  %v241_v21 = vld [vmem:[%s1561_s15 + $0x68] sm:$0xff]  ;;  %v249_v22 = vpack.c.bf16 %v239_v19, %v238_v18  ;;  %v242_v24 = vld [vmem:[%s1561_s15 + $0x70] sm:$0xff]  ;;  %1223 = vmatpush3.bf16.msra.mxu1 %v1326_v29 }
  0x1d   : > { %1204 = vmatprep.mubr.msk.bf16.mxu0 %vm268_vm0, %v246_v11  ;;  %v250_v23 = vpack.c.bf16 %v241_v21, %v240_v20  ;;  %v243_v25 = vld [vmem:[%s1561_s15 + $0x78] sm:$0xff]  ;;  %1224 = vmatprep.subr.bf16.mxu1 %v1327_v30  ;;  %s1086_s15 = sshll.u32 %s216_s14, 7 }
  0x1e   : > { %v251_v26 = vpack.c.bf16 %v243_v25, %v242_v24  ;;  %1249 = vmatpush3.bf16.msra.mxu0 %v1331_v34  ;;  %s1806_s23 = scalar_lea.vmem [#allocation2], %s1086_s15 }
  0x1f   : > { %s1020_s26 = sshll.u32 %s1806_s23, 4  ;;  %s1828_s26 = int_to_ptr.vmem [resolvable:$true] %s1020_s26 }
  0x20   : > { %1225 = vmatpush3.bf16.msra.mxu1 %v1327_v30  ;;  %s1403_s8 = scalar_lea.vmem %s1828_s26, 2048  ;;  %p1410_p0 = scmp.lt.s32.totalorder %s1828_s26, %s1408_s10 }
  0x21   : > { %1226 = vmatprep.subr.bf16.mxu1 %v1328_v31  ;;  %p1404_p11 = scmp.ne.s32.totalorder %s1828_s26, %s1403_s8  ;;  %p1411_p1 = scmp.lt.s32.totalorder %s1409_s11, %s1403_s8 }
  0x23   : > { %p1405_p12 = pnand %p1404_p11, %p1538_p5  ;;  %p1412_p2 = por %p1411_p1, %p1410_p0 }
  0x24   : > { %1205 = vmatmul.mubr.msk.bf16.gmra.mrb[4].mxu0 %vm268_vm0, %v247_v16  ;;  %1227 = vmatpush3.bf16.msra.mxu1 %v1328_v31 }
  0x25   : > { %1208 = vmatprep.mubr.msk.bf16.mxu0 %vm268_vm0, %v248_v17  ;;  %1228 = vmatprep.subr.bf16.mxu1 %v1329_v32  ;;  %p1406_p13 = pneg %p1405_p12 }
  0x27   : > { %p1413_p3 = pnand %p1412_p2, %p1406_p13 }
  0x28   : > { %1229 = vmatpush3.bf16.msra.mxu1 %v1329_v32 }
  0x29   : > { %1230 = vmatprep.subr.bf16.mxu1 %v1330_v33 }
  0x2c   : > { %1209 = vmatmul.mubr.msk.bf16.gmra.mrb[8].mxu0 %vm268_vm0, %v249_v22  ;;  %1231 = vmatpush3.bf16.msra.mxu1 %v1330_v33 }
  0x2d   : > { %1212 = vmatprep.mubr.msk.bf16.mxu0 %vm268_vm0, %v250_v23 }
  0x34   : > { %1213 = vmatmul.mubr.msk.bf16.gmra.mrb[12].mxu0 %vm268_vm0, %v251_v26 }
  0xef   : > { %v1202_v35 = vpop.f32.mrb[0].mxu0 }
  0xf0   : > { %v408_v36 = vmin.f32 %v1202_v35, 0.0  ;;  %v1611_v37 = vpop.f32.mrb[1].mxu0  ;;  %vm392_vm1 = vcmp.gt.f32.partialorder %v1202_v35, 0.0 }
  0xf1   : > { %v406_v38 = vmin.f32 %v1611_v37, 0.0  ;;  %v1203_v39 = vpop.f32.mrb[2].mxu0  ;;  %vm390_vm2 = vcmp.gt.f32.partialorder %v1611_v37, 0.0 }
  0xf2   : > { %v426_v40 = vmul.f32 1.442695, %v408_v36  ;;  %v409_v41 = vmin.f32 %v1203_v39, 0.0  ;;  %v1614_v42 = vpop.f32.mrb[3].mxu0  ;;  %vm393_vm3 = vcmp.gt.f32.partialorder %v1203_v39, 0.0 }
  0xf3   : > { %v422_v43 = vmul.f32 1.442695, %v406_v38  ;;  %v407_v44 = vmin.f32 %v1614_v42, 0.0  ;;  %vm391_vm4 = vcmp.gt.f32.partialorder %v1614_v42, 0.0 }
  0xf4   : > { %1339 = vpow2.f32 %v426_v40  ;;  %v428_v45 = vmul.f32 1.442695, %v409_v41 }
  0xf5   : > { %1341 = vpow2.f32 %v422_v43  ;;  %v424_v46 = vmul.f32 1.442695, %v407_v44 }
  0xf6   : > { %1343 = vpow2.f32 %v428_v45 }
  0xf7   : > { %1345 = vpow2.f32 %v424_v46  ;;  %v1617_v47 = vpop.f32.mrb[4].mxu0 }
  0xf8   : > { %v412_v48 = vmin.f32 %v1617_v47, 0.0  ;;  %v1620_v49 = vpop.f32.mrb[5].mxu0  ;;  %vm396_vm5 = vcmp.gt.f32.partialorder %v1617_v47, 0.0 }
  0xf9   : > { %v410_v50 = vmin.f32 %v1620_v49, 0.0  ;;  %v1623_v51 = vpop.f32.mrb[6].mxu0  ;;  %vm394_vm6 = vcmp.gt.f32.partialorder %v1620_v49, 0.0 }
  0xfa   : > { %v434_v52 = vmul.f32 1.442695, %v412_v48  ;;  %v413_v53 = vmin.f32 %v1623_v51, 0.0  ;;  %v1626_v54 = vpop.f32.mrb[7].mxu0  ;;  %vm397_vm7 = vcmp.gt.f32.partialorder %v1623_v51, 0.0 }
  0xfb   : > { %v430_v55 = vmul.f32 1.442695, %v410_v50  ;;  %v411_v56 = vmin.f32 %v1626_v54, 0.0  ;;  %vm395_vm8 = vcmp.gt.f32.partialorder %v1626_v54, 0.0 }
  0xfc   : > { %1347 = vpow2.f32 %v434_v52  ;;  %v436_v57 = vmul.f32 1.442695, %v413_v53 }
  0xfd   : > { %1349 = vpow2.f32 %v430_v55  ;;  %v432_v58 = vmul.f32 1.442695, %v411_v56 }
  0xfe   : > { %v1340_v59 = vpop.eup %1339  ;;  %1351 = vpow2.f32 %v436_v57 }
  0xff   : > { %v1342_v60 = vpop.eup %1341  ;;  %v1101_v61 = vadd.f32 -1.0, %v1340_v59  ;;  %1353 = vpow2.f32 %v432_v58  ;;  %v1629_v62 = vpop.f32.mrb[8].mxu0 }
 0x100   : > { %v1344_v63 = vpop.eup %1343  ;;  %v416_v0 = vmin.f32 %v1629_v62, 0.0  ;;  %v1632_v1 = vpop.f32.mrb[9].mxu0  ;;  %v1099_v10 = vadd.f32 -1.0, %v1342_v60  ;;  %vm400_vm9 = vcmp.gt.f32.partialorder %v1629_v62, 0.0 }
 0x101   : > { %v1346_v2 = vpop.eup %1345  ;;  %v472_v3 = vmul.f32 1.6732632, %v1101_v61  ;;  %v1102_v4 = vadd.f32 -1.0, %v1344_v63  ;;  %v414_v5 = vmin.f32 %v1632_v1, 0.0  ;;  %v1636_v6 = vpop.f32.mrb[10].mxu0  ;;  %vm398_vm10 = vcmp.gt.f32.partialorder %v1632_v1, 0.0 }
 0x102   : > { %v442_v7 = vmul.f32 1.442695, %v416_v0  ;;  %v417_v8 = vmin.f32 %v1636_v6, 0.0  ;;  %v1639_v9 = vpop.f32.mrb[11].mxu0  ;;  %v1100_v13 = vadd.f32 -1.0, %v1346_v2  ;;  %vm401_vm11 = vcmp.gt.f32.partialorder %v1636_v6, 0.0 }
 0x103   : > { %v473_v11 = vmul.f32 1.6732632, %v1102_v4  ;;  %v438_v12 = vmul.f32 1.442695, %v414_v5  ;;  %v488_v14 = vsel %vm392_vm1, %v1202_v35, %v472_v3  ;;  %v415_v16 = vmin.f32 %v1639_v9, 0.0 }
 0x104   : > { %1355 = vpow2.f32 %v442_v7  ;;  %v444_v15 = vmul.f32 1.442695, %v417_v8  ;;  %v470_v20 = vmul.f32 1.6732632, %v1099_v10  ;;  %v1647_v22 = vmul.f32 1.050701, %v488_v14 }
 0x105   : > { %v489_v17 = vsel %vm393_vm3, %v1203_v39, %v473_v11  ;;  %1357 = vpow2.f32 %v438_v12  ;;  %v440_v19 = vmul.f32 1.442695, %v415_v16  ;;  %v471_v25 = vmul.f32 1.6732632, %v1100_v13 }
 0x106   : > { %v1348_v18 = vpop.eup %1347  ;;  %1359 = vpow2.f32 %v444_v15  ;;  %v505_v27 = vmul.f32 1.050701, %v489_v17  ;;  %v486_v40 = vsel %vm390_vm2, %v1611_v37, %v470_v20  ;;  %vm399_vm12 = vcmp.gt.f32.partialorder %v1639_v9, 0.0 }
 0x107   : > { %v1350_v21 = vpop.eup %1349  ;;  %v1105_v23 = vadd.f32 -1.0, %v1348_v18  ;;  %v1649_v24 = vpop.f32.mrb[12].mxu0  ;;  %1361 = vpow2.f32 %v440_v19  ;;  %v487_v37 = vsel %vm391_vm4, %v1614_v42, %v471_v25  ;;  %v502_v42 = vmul.f32 1.050701, %v486_v40 }
 0x108   : > { %v1352_v26 = vpop.eup %1351  ;;  %v1103_v28 = vadd.f32 -1.0, %v1350_v21  ;;  %v420_v29 = vmin.f32 %v1649_v24, 0.0  ;;  %v1652_v30 = vpop.f32.mrb[13].mxu0  ;;  %v519_v3 = vpack.c.bf16 %v505_v27, %v1647_v22  ;;  %vm404_vm13 = vcmp.gt.f32.partialorder %v1649_v24, 0.0 }
 0x109   : > { %v1354_v31 = vpop.eup %1353  ;;  %v476_v32 = vmul.f32 1.6732632, %v1105_v23  ;;  %v1106_v33 = vadd.f32 -1.0, %v1352_v26  ;;  %v418_v34 = vmin.f32 %v1652_v30, 0.0  ;;  %v1656_v35 = vpop.f32.mrb[14].mxu0  ;;  %vm402_vm15 = vcmp.gt.f32.partialorder %v1652_v30, 0.0 }
 0x10a   : > { %v474_v36 = vmul.f32 1.6732632, %v1103_v28  ;;  %v1104_v38 = vadd.f32 -1.0, %v1354_v31  ;;  %v450_v39 = vmul.f32 1.442695, %v420_v29  ;;  %v421_v45 = vmin.f32 %v1656_v35, 0.0 }
 0x10b   : > { %v492_v41 = vsel %vm396_vm5, %v1617_v47, %v476_v32  ;;  %v477_v43 = vmul.f32 1.6732632, %v1106_v33  ;;  %v446_v44 = vmul.f32 1.442695, %v418_v34  ;;  %v1665_v46 = vpop.f32.mrb[15].mxu0  ;;  %vm405_vm14 = vcmp.gt.f32.partialorder %v1656_v35, 0.0 }
 0x10c   : > { %v490_v48 = vsel %vm394_vm6, %v1620_v49, %v474_v36  ;;  %v475_v50 = vmul.f32 1.6732632, %v1104_v38  ;;  %1363 = vpow2.f32 %v450_v39  ;;  %v508_v52 = vmul.f32 1.050701, %v492_v41 }
 0x10d   : > { %v493_v47 = vsel %vm397_vm7, %v1623_v51, %v477_v43  ;;  %1365 = vpow2.f32 %v446_v44  ;;  %v452_v53 = vmul.f32 1.442695, %v421_v45  ;;  %v506_v56 = vmul.f32 1.050701, %v490_v48 }
 0x10e   : > { %v1356_v55 = vpop.eup %1355  ;;  %v509_v57 = vmul.f32 1.050701, %v493_v47  ;;  %v491_v49 = vsel %vm395_vm8, %v1626_v54, %v475_v50  ;;  %v419_v58 = vmin.f32 %v1665_v46, 0.0  ;;  %v503_v51 = vmul.f32 1.050701, %v487_v37  ;;  %v1335_v50 = vld [vmem:[%s1879_s3 + $0x20] sm:$0xff]  }
 0x10f   : > { %v1358_v59 = vpop.eup %1357  ;;  %v507_v60 = vmul.f32 1.050701, %v491_v49  ;;  %v1109_v61 = vadd.f32 -1.0, %v1356_v55  ;;  %1367 = vpow2.f32 %v452_v53  ;;  %vm403_vm0 = vcmp.gt.f32.partialorder %v1665_v46, 0.0  ;;  %v1336_v37 = vld [vmem:[%s1879_s3 + $0x28] sm:$0xff]   ;;  %v1338_v47 = vld [vmem:[%s1879_s3 + $0x38] sm:$0xff]  }
 0x110   : > { %v1360_v63 = vpop.eup %1359  ;;  %v1107_v0 = vadd.f32 -1.0, %v1358_v59  ;;  %v448_v2 = vmul.f32 1.442695, %v419_v58  ;;  %v521_v8 = vpack.c.bf16 %v509_v57, %v508_v52  ;;  %v518_v11 = vpack.c.bf16 %v503_v51, %v502_v42  ;;  %v1337_v52 = vld [vmem:[%s1879_s3 + $0x30] sm:$0xff]  }
 0x111   : > { %v480_v4 = vmul.f32 1.6732632, %v1109_v61  ;;  %v1110_v5 = vadd.f32 -1.0, %v1360_v63  ;;  %v520_v7 = vpack.c.bf16 %v507_v60, %v506_v56  ;;  %v1362_v10 = vpop.eup %1361 }
 0x112   : > { %v478_v54 = vmul.f32 1.6732632, %v1107_v0  ;;  %1369 = vpow2.f32 %v448_v2  ;;  %v1108_v14 = vadd.f32 -1.0, %v1362_v10  ;;  %1232 = vmatprep.mubr.bf16.mxu1 %v518_v11 }
 0x113   : > { %v496_v12 = vsel %vm400_vm9, %v1629_v62, %v480_v4  ;;  %v481_v13 = vmul.f32 1.6732632, %v1110_v5  ;;  %1233 = vmatmul.mubr.bf16.vlgmr.msra.gmra.mrb[0].mxu1 %v519_v3 }
 0x114   : > { %v494_v15 = vsel %vm398_vm10, %v1632_v1, %v478_v54  ;;  %v479_v17 = vmul.f32 1.6732632, %v1108_v14  ;;  %v512_v19 = vmul.f32 1.050701, %v496_v12  ;;  %1236 = vmatprep.mubr.bf16.mxu1 %v520_v7 }
 0x115   : > { %v497_v16 = vsel %vm401_vm11, %v1636_v6, %v481_v13  ;;  %v510_v23 = vmul.f32 1.050701, %v494_v15 }
 0x116   : > { %v1364_v18 = vpop.eup %1363  ;;  %v513_v20 = vmul.f32 1.050701, %v497_v16  ;;  %v495_v21 = vsel %vm399_vm12, %v1639_v9, %v479_v17 }
 0x117   : > { %v1366_v62 = vpop.eup %1365  ;;  %v1113_v22 = vadd.f32 -1.0, %v1364_v18  ;;  %v511_v25 = vmul.f32 1.050701, %v495_v21 }
 0x118   : > { %v1111_v26 = vadd.f32 -1.0, %v1366_v62  ;;  %v523_v27 = vpack.c.bf16 %v513_v20, %v512_v19 }
 0x119   : > { %v1368_v28 = vpop.eup %1367  ;;  %v484_v1 = vmul.f32 1.6732632, %v1113_v22  ;;  %v522_v6 = vpack.c.bf16 %v511_v25, %v510_v23 }
 0x11a   : > { %v1114_v29 = vadd.f32 -1.0, %v1368_v28  ;;  %v482_v31 = vmul.f32 1.6732632, %v1111_v26 }
 0x11b   : > { %v500_v33 = vsel %vm404_vm13, %v1649_v24, %v484_v1  ;;  %1237 = vmatmul.mubr.bf16.gmra.mrb[4].mxu1 %v521_v8 }
 0x11c   : > { %v1370_v32 = vpop.eup %1369  ;;  %v485_v34 = vmul.f32 1.6732632, %v1114_v29  ;;  %1240 = vmatprep.mubr.bf16.mxu1 %v522_v6  ;;  %v516_v38 = vmul.f32 1.050701, %v500_v33  ;;  %v498_v39 = vsel %vm402_vm15, %v1652_v30, %v482_v31  ;;  %v1333_v30 = vld [vmem:[%s1879_s3 + $0x10] sm:$0xff]  }
 0x11d   : > { %v1112_v36 = vadd.f32 -1.0, %v1370_v32  ;;  %v514_v44 = vmul.f32 1.050701, %v498_v39 }
 0x11e   : > { %v501_v9 = vsel %vm405_vm14, %v1656_v35, %v485_v34  ;;  %v1332_v35 = vld [vmem:[%s1879_s3 + $0x8] sm:$0xff]  }
 0x11f   : > { %v517_v40 = vmul.f32 1.050701, %v501_v9  ;;  %v483_v41 = vmul.f32 1.6732632, %v1112_v36  ;;  %1250 = vmatprep.subr.bf16.mxu0 %v1332_v35 }
 0x120   : > { %1251 = vmatpush3.bf16.msra.mxu0 %v1332_v35 }
 0x121   : > { %v499_v43 = vsel %vm403_vm0, %v1665_v46, %v483_v41  ;;  %v525_v24 = vpack.c.bf16 %v517_v40, %v516_v38  ;;  %1252 = vmatprep.subr.bf16.mxu0 %v1333_v30  ;;  %v1334_v46 = vld [vmem:[%s1879_s3 + $0x18] sm:$0xff]  }
 0x122   : > { %v515_v45 = vmul.f32 1.050701, %v499_v43 }
 0x123   : > { %1241 = vmatmul.mubr.bf16.gmra.mrb[8].mxu1 %v523_v27 }
 0x124   : > { %v524_v48 = vpack.c.bf16 %v515_v45, %v514_v44  ;;  %1253 = vmatpush3.bf16.msra.mxu0 %v1333_v30 }
 0x125   : > { %1254 = vmatprep.subr.bf16.mxu0 %v1334_v46 }
 0x126   : > { %1244 = vmatprep.mubr.bf16.mxu1 %v524_v48 }
 0x128   : > { %1255 = vmatpush3.bf16.msra.mxu0 %v1334_v46 }
 0x129   : > { %1256 = vmatprep.subr.bf16.mxu0 %v1335_v50 }
 0x12b   : > { %1245 = vmatmul.mubr.bf16.gmra.mrb[12].mxu1 %v525_v24 }
 0x12c   : > { %1257 = vmatpush3.bf16.msra.mxu0 %v1335_v50 }
 0x12d   : > { %1258 = vmatprep.subr.bf16.mxu0 %v1336_v37 }
 0x130   : > { %1259 = vmatpush3.bf16.msra.mxu0 %v1336_v37 }
 0x131   : > { %1260 = vmatprep.subr.bf16.mxu0 %v1337_v52 }
 0x134   : > { %1261 = vmatpush3.bf16.msra.mxu0 %v1337_v52 }
 0x135   : > { %1262 = vmatprep.subr.bf16.mxu0 %v1338_v47 }
 0x138   : > { %1263 = vmatpush3.bf16.msra.mxu0 %v1338_v47 }
 0x1e6   : > { %v1234_v53 = vpop.f32.mrb[0].mxu1 }
 0x1e7   : > { %v705_v55 = vmin.f32 %v1234_v53, 0.0  ;;  %v1718_v56 = vpop.f32.mrb[1].mxu1  ;;  %vm689_vm1 = vcmp.gt.f32.partialorder %v1234_v53, 0.0 }
 0x1e8   : > { %v703_v57 = vmin.f32 %v1718_v56, 0.0  ;;  %v1235_v49 = vpop.f32.mrb[2].mxu1  ;;  %vm687_vm2 = vcmp.gt.f32.partialorder %v1718_v56, 0.0 }
 0x1e9   : > { %v723_v58 = vmul.f32 1.442695, %v705_v55  ;;  %v706_v59 = vmin.f32 %v1235_v49, 0.0  ;;  %v1721_v60 = vpop.f32.mrb[3].mxu1  ;;  %vm690_vm3 = vcmp.gt.f32.partialorder %v1235_v49, 0.0 }
 0x1ea   : > { %v719_v61 = vmul.f32 1.442695, %v703_v57  ;;  %v704_v42 = vmin.f32 %v1721_v60, 0.0  ;;  %vm688_vm4 = vcmp.gt.f32.partialorder %v1721_v60, 0.0 }
 0x1eb   : > { %1371 = vpow2.f32 %v723_v58  ;;  %v725_v63 = vmul.f32 1.442695, %v706_v59 }
 0x1ec   : > { %1373 = vpow2.f32 %v719_v61  ;;  %v721_v0 = vmul.f32 1.442695, %v704_v42 }
 0x1ed   : > { %1375 = vpow2.f32 %v725_v63 }
 0x1ee   : > { %1377 = vpow2.f32 %v721_v0  ;;  %v1724_v2 = vpop.f32.mrb[4].mxu1 }
 0x1ef   : > { %v709_v51 = vmin.f32 %v1724_v2, 0.0  ;;  %v1727_v3 = vpop.f32.mrb[5].mxu1  ;;  %vm693_vm5 = vcmp.gt.f32.partialorder %v1724_v2, 0.0 }
 0x1f0   : > { %v707_v4 = vmin.f32 %v1727_v3, 0.0  ;;  %v1730_v5 = vpop.f32.mrb[6].mxu1  ;;  %vm691_vm6 = vcmp.gt.f32.partialorder %v1727_v3, 0.0 }
 0x1f1   : > { %v731_v7 = vmul.f32 1.442695, %v709_v51  ;;  %v710_v8 = vmin.f32 %v1730_v5, 0.0  ;;  %v1733_v10 = vpop.f32.mrb[7].mxu1  ;;  %vm694_vm7 = vcmp.gt.f32.partialorder %v1730_v5, 0.0 }
 0x1f2   : > { %v727_v54 = vmul.f32 1.442695, %v707_v4  ;;  %v708_v11 = vmin.f32 %v1733_v10, 0.0  ;;  %vm692_vm8 = vcmp.gt.f32.partialorder %v1733_v10, 0.0 }
 0x1f3   : > { %1379 = vpow2.f32 %v731_v7  ;;  %v733_v12 = vmul.f32 1.442695, %v710_v8 }
 0x1f4   : > { %1381 = vpow2.f32 %v727_v54  ;;  %v729_v13 = vmul.f32 1.442695, %v708_v11 }
 0x1f5   : > { %v1372_v14 = vpop.eup %1371  ;;  %1383 = vpow2.f32 %v733_v12 }
 0x1f6   : > { %v1374_v15 = vpop.eup %1373  ;;  %v1125_v16 = vadd.f32 -1.0, %v1372_v14  ;;  %1385 = vpow2.f32 %v729_v13  ;;  %v1736_v17 = vpop.f32.mrb[8].mxu1 }
 0x1f7   : > { %v1376_v18 = vpop.eup %1375  ;;  %v1123_v19 = vadd.f32 -1.0, %v1374_v15  ;;  %v713_v20 = vmin.f32 %v1736_v17, 0.0  ;;  %v1739_v62 = vpop.f32.mrb[9].mxu1  ;;  %vm697_vm9 = vcmp.gt.f32.partialorder %v1736_v17, 0.0 }
 0x1f8   : > { %v1378_v21 = vpop.eup %1377  ;;  %v769_v22 = vmul.f32 1.6732632, %v1125_v16  ;;  %v1126_v23 = vadd.f32 -1.0, %v1376_v18  ;;  %v711_v25 = vmin.f32 %v1739_v62, 0.0  ;;  %v1742_v26 = vpop.f32.mrb[10].mxu1  ;;  %vm695_vm11 = vcmp.gt.f32.partialorder %v1739_v62, 0.0 }
 0x1f9   : > { %v1124_v27 = vadd.f32 -1.0, %v1378_v21  ;;  %v739_v28 = vmul.f32 1.442695, %v713_v20  ;;  %v714_v31 = vmin.f32 %v1742_v26, 0.0  ;;  %v1746_v32 = vpop.f32.mrb[11].mxu1  ;;  %vm698_vm10 = vcmp.gt.f32.partialorder %v1742_v26, 0.0 }
 0x1fa   : > { %v785_v1 = vsel %vm689_vm1, %v1234_v53, %v769_v22  ;;  %v770_v29 = vmul.f32 1.6732632, %v1126_v23  ;;  %v735_v6 = vmul.f32 1.442695, %v711_v25  ;;  %v767_v33 = vmul.f32 1.6732632, %v1123_v19 }
 0x1fb   : > { %1387 = vpow2.f32 %v739_v28  ;;  %v768_v36 = vmul.f32 1.6732632, %v1124_v27  ;;  %v741_v9 = vmul.f32 1.442695, %v714_v31  ;;  %v801_v39 = vmul.f32 1.050701, %v785_v1 }
 0x1fc   : > { %v786_v34 = vsel %vm690_vm3, %v1235_v49, %v770_v29  ;;  %1389 = vpow2.f32 %v735_v6  ;;  %v712_v41 = vmin.f32 %v1746_v32, 0.0  ;;  %v783_v48 = vsel %vm687_vm2, %v1718_v56, %v767_v33 }
 0x1fd   : > { %v1380_v38 = vpop.eup %1379  ;;  %v802_v40 = vmul.f32 1.050701, %v786_v34  ;;  %1391 = vpow2.f32 %v741_v9  ;;  %v784_v52 = vsel %vm688_vm4, %v1721_v60, %v768_v36  ;;  %v799_v61 = vmul.f32 1.050701, %v783_v48 }
 0x1fe   : > { %v1382_v43 = vpop.eup %1381  ;;  %v1129_v24 = vadd.f32 -1.0, %v1380_v38  ;;  %v1754_v44 = vpop.f32.mrb[12].mxu1  ;;  %v737_v46 = vmul.f32 1.442695, %v712_v41  ;;  %v800_v0 = vmul.f32 1.050701, %v784_v52 }
 0x1ff   : > { %v1384_v45 = vpop.eup %1383  ;;  %v816_v35 = vpack.c.bf16 %v802_v40, %v801_v39  ;;  %v1127_v30 = vadd.f32 -1.0, %v1382_v43  ;;  %v1759_v50 = vpop.f32.mrb[13].mxu1  ;;  %v717_v55 = vmin.f32 %v1754_v44, 0.0  ;;  %vm696_vm12 = vcmp.gt.f32.partialorder %v1746_v32, 0.0 }
 0x200   : > { %v1386_v37 = vpop.eup %1385  ;;  %v773_v47 = vmul.f32 1.6732632, %v1129_v24  ;;  %v1130_v53 = vadd.f32 -1.0, %v1384_v45  ;;  %v1765_v57 = vpop.f32.mrb[14].mxu1  ;;  %1393 = vpow2.f32 %v737_v46  ;;  %v715_v56 = vmin.f32 %v1759_v50, 0.0 }
 0x201   : > { %v771_v49 = vmul.f32 1.6732632, %v1127_v30  ;;  %v1128_v58 = vadd.f32 -1.0, %v1386_v37  ;;  %v1768_v59 = vpop.f32.mrb[15].mxu1  ;;  %v747_v60 = vmul.f32 1.442695, %v717_v55  ;;  %v815_v21 = vpack.c.bf16 %v800_v0, %v799_v61 }
 0x202   : > { %v789_v42 = vsel %vm693_vm5, %v1724_v2, %v773_v47  ;;  %v774_v63 = vmul.f32 1.6732632, %v1130_v53  ;;  %v743_v7 = vmul.f32 1.442695, %v715_v56  ;;  %v718_v11 = vmin.f32 %v1765_v57, 0.0 }
 0x203   : > { %v787_v51 = vsel %vm691_vm6, %v1727_v3, %v771_v49  ;;  %v772_v4 = vmul.f32 1.6732632, %v1128_v58  ;;  %v805_v8 = vmul.f32 1.050701, %v789_v42  ;;  %1395 = vpow2.f32 %v747_v60  ;;  %1264 = vmatprep.mubr.bf16.mxu0 %v815_v21 }
 0x204   : > { %v790_v54 = vsel %vm694_vm7, %v1730_v5, %v774_v63  ;;  %v803_v13 = vmul.f32 1.050701, %v787_v51  ;;  %1397 = vpow2.f32 %v743_v7  ;;  %v749_v18 = vmul.f32 1.442695, %v718_v11  ;;  %1265 = vmatmul.mubr.bf16.vlgmr.msra.gmra.mrb[16].mxu0 %v816_v35 }
 0x205   : > { %v1388_v12 = vpop.eup %1387  ;;  %v806_v2 = vmul.f32 1.050701, %v790_v54  ;;  %v788_v14 = vsel %vm692_vm8, %v1733_v10, %v772_v4  ;;  %v716_v19 = vmin.f32 %v1768_v59, 0.0  ;;  %vm701_vm13 = vcmp.gt.f32.partialorder %v1754_v44, 0.0 }
 0x206   : > { %v1390_v15 = vpop.eup %1389  ;;  %v804_v3 = vmul.f32 1.050701, %v788_v14  ;;  %v1133_v16 = vadd.f32 -1.0, %v1388_v12  ;;  %1399 = vpow2.f32 %v749_v18  ;;  %vm699_vm14 = vcmp.gt.f32.partialorder %v1759_v50, 0.0 }
 0x207   : > { %v1131_v20 = vadd.f32 -1.0, %v1390_v15  ;;  %v818_v5 = vpack.c.bf16 %v806_v2, %v805_v8  ;;  %v1392_v22 = vpop.eup %1391  ;;  %v745_v25 = vmul.f32 1.442695, %v716_v19  ;;  %vm702_vm15 = vcmp.gt.f32.partialorder %v1765_v57, 0.0 }
 0x208   : > { %v777_v23 = vmul.f32 1.6732632, %v1133_v16  ;;  %v817_v27 = vpack.c.bf16 %v804_v3, %v803_v13  ;;  %v1134_v28 = vadd.f32 -1.0, %v1392_v22  ;;  %vm700_vm0 = vcmp.gt.f32.partialorder %v1768_v59, 0.0 }
 0x209   : > { %v775_v10 = vmul.f32 1.6732632, %v1131_v20  ;;  %1401 = vpow2.f32 %v745_v25 }
 0x20a   : > { %v1394_v1 = vpop.eup %1393  ;;  %v793_v29 = vsel %vm697_vm9, %v1736_v17, %v777_v23  ;;  %v778_v6 = vmul.f32 1.6732632, %v1134_v28  ;;  %1268 = vmatprep.mubr.bf16.mxu0 %v817_v27 }
 0x20b   : > { %v1132_v31 = vadd.f32 -1.0, %v1394_v1  ;;  %v809_v36 = vmul.f32 1.050701, %v793_v29  ;;  %v791_v9 = vsel %vm695_vm11, %v1739_v62, %v775_v10 }
 0x20c   : > { %v794_v33 = vsel %vm698_vm10, %v1742_v26, %v778_v6  ;;  %v807_v45 = vmul.f32 1.050701, %v791_v9  ;;  %1269 = vmatmul.mubr.bf16.gmra.mrb[20].mxu0 %v818_v5 }
 0x20d   : > { %v1396_v34 = vpop.eup %1395  ;;  %v810_v38 = vmul.f32 1.050701, %v794_v33  ;;  %v776_v39 = vmul.f32 1.6732632, %v1132_v31 }
 0x20e   : > { %v1398_v40 = vpop.eup %1397  ;;  %v1137_v41 = vadd.f32 -1.0, %v1396_v34 }
 0x20f   : > { %v792_v17 = vsel %vm696_vm12, %v1746_v32, %v776_v39  ;;  %v1135_v43 = vadd.f32 -1.0, %v1398_v40  ;;  %v820_v24 = vpack.c.bf16 %v810_v38, %v809_v36 }
 0x210   : > { %v808_v48 = vmul.f32 1.050701, %v792_v17  ;;  %v781_v35 = vmul.f32 1.6732632, %v1137_v41  ;;  %v1400_v30 = vpop.eup %1399 }
 0x211   : > { %v779_v26 = vmul.f32 1.6732632, %v1135_v43  ;;  %v1138_v46 = vadd.f32 -1.0, %v1400_v30 }
 0x212   : > { %v819_v37 = vpack.c.bf16 %v808_v48, %v807_v45  ;;  %v797_v62 = vsel %vm701_vm13, %v1754_v44, %v781_v35 }
 0x213   : > { %v1402_v52 = vpop.eup %1401  ;;  %v782_v47 = vmul.f32 1.6732632, %v1138_v46  ;;  %v795_v32 = vsel %vm699_vm14, %v1759_v50, %v779_v26  ;;  %v813_v58 = vmul.f32 1.050701, %v797_v62  ;;  %v1139_v50 = vld [vmem:[%s1880_s4] ss:$0 sm:$0xff] }
 0x214   : > { %v1136_v53 = vadd.f32 -1.0, %v1402_v52  ;;  %1272 = vmatprep.mubr.bf16.mxu0 %v819_v37  ;;  %v811_v61 = vmul.f32 1.050701, %v795_v32 }
 0x215   : > { %v798_v55 = vsel %vm702_vm15, %v1765_v57, %v782_v47  ;;  %1273 = vmatmul.mubr.bf16.gmra.mrb[24].mxu0 %v820_v24 }
 0x216   : > { %v780_v49 = vmul.f32 1.6732632, %v1136_v53  ;;  %v814_v56 = vmul.f32 1.050701, %v798_v55 }
 0x218   : > { %v796_v44 = vsel %vm700_vm0, %v1768_v59, %v780_v49  ;;  %v822_v63 = vpack.c.bf16 %v814_v56, %v813_v58 }
 0x219   : > { %v812_v42 = vmul.f32 1.050701, %v796_v44 }
 0x21b   : > { %v821_v60 = vpack.c.bf16 %v812_v42, %v811_v61 }
 0x21d   : > { %1276 = vmatprep.mubr.bf16.mxu0 %v821_v60 }
 0x21e   : > { %1277 = vmatmul.mubr.bf16.gmra.mrb[28].mxu0 %v822_v63 }
 0x2d7   : > { %v1266_v57 = vpop.f32.mrb[16].mxu0 }
 0x2d8   : > { %v936_v0 = vadd.f32 %v1266_v57, %v1139_v50  ;;  %v927_v51 = vpop.f32.mrb[17].mxu0 }
 0x2d9   : > { %v928_v4 = vadd.f32 %v1139_v50, %v927_v51  ;;  %v1267_v7 = vpop.f32.mrb[18].mxu0 }
 0x2da   : > { %992 = vst [vmem:[%s1806_s23 + $0x10] sm:$0xff] %v936_v0  ;;  %v939_v59 = vadd.f32 %v1267_v7, %v1139_v50  ;;  %v930_v8 = vpop.f32.mrb[19].mxu0 }
 0x2db   : > { %990 = vst [vmem:[%s1806_s23] sm:$0xff] %v928_v4  ;;  %v931_v54 = vadd.f32 %v1139_v50, %v930_v8 }
 0x2dc   : > { %993 = vst [vmem:[%s1806_s23 + $0x18] sm:$0xff] %v939_v59 }
 0x2dd   : > { %991 = vst [vmem:[%s1806_s23 + $0x8] sm:$0xff] %v931_v54 }
 0x2df   : > { %v1270_v11 = vpop.f32.mrb[20].mxu0 }
 0x2e0   : > { %v952_v12 = vadd.f32 %v1270_v11, %v1139_v50  ;;  %v943_v13 = vpop.f32.mrb[21].mxu0 }
 0x2e1   : > { %v944_v2 = vadd.f32 %v1139_v50, %v943_v13  ;;  %v1271_v14 = vpop.f32.mrb[22].mxu0 }
 0x2e2   : > { %996 = vst [vmem:[%s1806_s23 + $0x30] sm:$0xff] %v952_v12  ;;  %v955_v15 = vadd.f32 %v1271_v14, %v1139_v50  ;;  %v946_v3 = vpop.f32.mrb[23].mxu0 }
 0x2e3   : > { %994 = vst [vmem:[%s1806_s23 + $0x20] sm:$0xff] %v944_v2  ;;  %v947_v16 = vadd.f32 %v1139_v50, %v946_v3 }
 0x2e4   : > { %997 = vst [vmem:[%s1806_s23 + $0x38] sm:$0xff] %v955_v15 }
 0x2e5   : > { %995 = vst [vmem:[%s1806_s23 + $0x28] sm:$0xff] %v947_v16 }
 0x2e8   : > { %v1274_v18 = vpop.f32.mrb[24].mxu0 }
 0x2e9   : > { %v968_v19 = vadd.f32 %v1274_v18, %v1139_v50  ;;  %v959_v20 = vpop.f32.mrb[25].mxu0 }
 0x2ea   : > { %v960_v21 = vadd.f32 %v1139_v50, %v959_v20  ;;  %v1275_v5 = vpop.f32.mrb[26].mxu0 }
 0x2eb   : > { %1000 = vst [vmem:[%s1806_s23 + $0x50] sm:$0xff] %v968_v19  ;;  %v971_v22 = vadd.f32 %v1275_v5, %v1139_v50  ;;  %v962_v23 = vpop.f32.mrb[27].mxu0 }
 0x2ec   : > { %998 = vst [vmem:[%s1806_s23 + $0x40] sm:$0xff] %v960_v21  ;;  %v963_v25 = vadd.f32 %v1139_v50, %v962_v23 }
 0x2ed   : > { %1001 = vst [vmem:[%s1806_s23 + $0x58] sm:$0xff] %v971_v22 }
 0x2ee   : > { %999 = vst [vmem:[%s1806_s23 + $0x48] sm:$0xff] %v963_v25 }
 0x2f1   : > { %v1278_v27 = vpop.f32.mrb[28].mxu0 }
 0x2f2   : > { %v984_v28 = vadd.f32 %v1278_v27, %v1139_v50  ;;  %v975_v10 = vpop.f32.mrb[29].mxu0 }
 0x2f3   : > { %v976_v1 = vadd.f32 %v1139_v50, %v975_v10  ;;  %v1279_v29 = vpop.f32.mrb[30].mxu0 }
 0x2f4   : > { %1004 = vst [vmem:[%s1806_s23 + $0x70] sm:$0xff] %v984_v28  ;;  %v987_v6 = vadd.f32 %v1279_v29, %v1139_v50  ;;  %v978_v31 = vpop.f32.mrb[31].mxu0 }
 0x2f5   : > { %1002 = vst [vmem:[%s1806_s23 + $0x60] sm:$0xff] %v976_v1  ;;  %v979_v33 = vadd.f32 %v1139_v50, %v978_v31 }
 0x2f6   : > { %1005 = vst [vmem:[%s1806_s23 + $0x78] sm:$0xff] %v987_v6 }
 0x2f7   : > { %1003 = vst [vmem:[%s1806_s23 + $0x68] sm:$0xff] %v979_v33 }
 0x2f8   : > { %1416 = shalt.err (!%p1413_p3)
}
 0x2f9   : > { %s1417_s12 = scalar_lea.hbm %s1826_s7, 2048  ;;  %s1421_s15 = scalar_lea.hbm %s1881_s5, 4096 }
 0x2fa   : > { %p1418_p4 = scmp.ne.s32.totalorder %s1826_s7, %s1417_s12  ;;  %p1422_p9 = scmp.lt.u32.totalorder %s1826_s7, %s1881_s5 }
 0x2fb   : > { %p1423_p10 = scmp.lt.u32.totalorder %s1421_s15, %s1417_s12  ;;  %p1425_p12 = scmp.lt.u32.totalorder %s1417_s12, %s1826_s7 }
 0x2fc   : > { %p1419_p7 = pnand %p1418_p4, %p1538_p5 }
 0x2fd   : > { %p1424_p11 = por %p1423_p10, %p1422_p9 }
 0x2fe   : > { %p1420_p8 = pneg %p1419_p7 }
 0x2ff   : > { %p1426_p13 = por %p1425_p12, %p1424_p11 }
 0x301   : > { %p1427_p0 = pnand %p1426_p13, %p1420_p8 }
 0x303   : > { %1430 = shalt.err (!%p1427_p0)
}
 0x304   : > { %s1468_s23 = smov 128   ;;  %s1469_s25 = smov 8  }
 0x305   : > { %1280 = dma.vmem_to_hbm [thread:$0]  (%p1538_p5), %s1828_s26, 2048, %s1826_s7, %s1835_s22, %s1468_s23, %s1468_s23, %s1469_s25  }
 0x306 PF: > { %p1286_p1 = scmp.ge.s32.totalorder %s1465_s21, 2  ;;  %s1035_s30 = sand.u32 1, %s1453_s18  }
 0x307   : > { %s1036_s6 = scalar_lea.sflag [#allocation3], %s1035_s30 }
 0x308   : > { %p1283_p2 = pnand %p1286_p1, %p1542_p6 }
 0x30a   : > { %1448 = dma.done.wait (!%p1283_p2), %s1036_s6, 2048  }
 0x30b   : > { %1450 = vsyncadd (!%p1283_p2), %s1036_s6, 4294965248  ;;  %p15_p3 = scmp.ge.s32.totalorder %s1525_s24, 4   ;;  %s1884_s18 = smov %s1457_s19 }
 0x30c   : > { %s1885_s19 = smov %s1461_s20  ;;  %s1886_s20 = smov %s1536_s27 }
 0x30d   : > { %s1887_s21 = smov %s1525_s24  ;;  %17 = sbr.rel (!%p15_p3) target bundleno = 3 (0x3), region = 75 }
 0x314   :  { %1041 = vsyncpa [#allocation3], 1 }
 0x315   :  { %1043 = vsyncpa [#allocation3 + $0x1], 1 }

</bundles_post_ra>
